<compile_context>
chip_gen: v6e
topology: v6e:2x2x1
jax: 0.10.0
libtpu: 0.0.40
codegen_flags: <defaults>
</compile_context>

<pallas_src>
import functools

import jax
import jax.numpy as jnp
from jax.experimental import pallas as pl
from jax.experimental.pallas import tpu as pltpu


# ----------------------------------------------------------------------------
# Fused kernel: 3 LSTM layers + Linear + Tanh, everything resident in VMEM.
# ----------------------------------------------------------------------------
def _covid_lstm_kernel(S, B, H,
                       x_ref,
                       wih1_ref, whh1_ref, b1_ref,
                       wih2_ref, whh2_ref, b2_ref,
                       wih3_ref, whh3_ref, b3_ref,
                       lw_ref, lb_ref,
                       out_ref,
                       seq_ref):
    """x_ref: (S*B, F) time-major rows; seq_ref: (S*B, H) VMEM scratch."""

    def run_layer(inp2d, wih_ref, whh_ref, b_ref):
        # Hoisted input projection: ONE (S*B, F_in) @ (F_in, 4H) matmul + bias.
        zx = (jnp.dot(inp2d, wih_ref[...], preferred_element_type=jnp.float32)
              + b_ref[...])                                  # (S*B, 4H)
        whh = whh_ref[...]                                   # (H, 4H), loaded once
        h = jnp.zeros((B, H), jnp.float32)
        c = jnp.zeros((B, H), jnp.float32)
        # Sequential recurrence: only h_prev @ W_hh remains per step.
        # Statically unrolled (S is small and static); for long sequences this
        # would become lax.fori_loop with pl.ds indexing into a zx scratch.
        for t in range(S):
            z = zx[t * B:(t + 1) * B, :] + jnp.dot(
                h, whh, preferred_element_type=jnp.float32)  # (B, 4H)
            zs = jax.nn.sigmoid(z)      # full-width EUP pass
            zt = jnp.tanh(z)            # full-width EUP pass
            i_g = zs[:, 0 * H:1 * H]
            f_g = zs[:, 1 * H:2 * H]
            g_g = zt[:, 2 * H:3 * H]
            o_g = zs[:, 3 * H:4 * H]
            c = f_g * c + i_g * g_g
            h = o_g * jnp.tanh(c)
            seq_ref[t * B:(t + 1) * B, :] = h                # VMEM scratch write
        return seq_ref[...]                                  # (S*B, H)

    # TODO(synk): on v7x with a real batch size, shard the batch over the two
    # TensorCores (leading "parallel" grid axis); unnecessary at B=2.
    h1 = run_layer(x_ref[...], wih1_ref, whh1_ref, b1_ref)
    h2 = run_layer(h1, wih2_ref, whh2_ref, b2_ref)
    h3 = run_layer(h2, wih3_ref, whh3_ref, b3_ref)

    # Final nn.Sequential(nn.Linear(H, F), nn.Tanh()): one matmul, one store.
    out_ref[...] = jnp.tanh(
        jnp.dot(h3, lw_ref[...], preferred_element_type=jnp.float32)
        + lb_ref[...])


def covid_lstm_forward(x_bsf, params):
    """x_bsf: (B, S, F) batch-first, like the PyTorch module."""
    B, S, F = x_bsf.shape
    H = params["lstm"][0]["whh_t"].shape[0]
    # Time-major 2D view (row t*B + b == x[b, t]); a one-off ~256 B relayout.
    x_tm = jnp.transpose(x_bsf, (1, 0, 2)).reshape(S * B, F)

    args = [x_tm]
    for layer in params["lstm"]:
        args.extend([layer["wih_t"], layer["whh_t"], layer["b"]])
    args.extend([params["lin_w_t"], params["lin_b"]])

    y = pl.pallas_call(
        functools.partial(_covid_lstm_kernel, S, B, H),
        out_shape=jax.ShapeDtypeStruct((S * B, F), jnp.float32),
        scratch_shapes=[pltpu.VMEM((S * B, H), jnp.float32)],
    )(*args)

    return jnp.transpose(y.reshape(S, B, F), (1, 0, 2))      # back to (B, S, F)


# ----------------------------------------------------------------------------
# Parameters (deterministic init, PyTorch-style uniform(-1/sqrt(H), 1/sqrt(H)))
# ----------------------------------------------------------------------------
def init_params(key, n_hidden, n_features):
    bound = 1.0 / jnp.sqrt(jnp.float32(n_hidden))
    params = {"lstm": []}
    in_dims = [n_features, n_hidden, n_hidden]
    for in_dim in in_dims:
        key, k1, k2, k3, k4 = jax.random.split(key, 5)
        w_ih = jax.random.uniform(k1, (4 * n_hidden, in_dim), jnp.float32, -bound, bound)
        w_hh = jax.random.uniform(k2, (4 * n_hidden, n_hidden), jnp.float32, -bound, bound)
        b_ih = jax.random.uniform(k3, (4 * n_hidden,), jnp.float32, -bound, bound)
        b_hh = jax.random.uniform(k4, (4 * n_hidden,), jnp.float32, -bound, bound)
        params["lstm"].append({
            "wih_t": w_ih.T,                              # (in_dim, 4H)
            "whh_t": w_hh.T,                              # (H, 4H)
            "b": (b_ih + b_hh).reshape(1, 4 * n_hidden),  # (1, 4H)
        })
    key, k5, k6 = jax.random.split(key, 3)
    lin_bound = 1.0 / jnp.sqrt(jnp.float32(n_hidden))
    lin_w = jax.random.uniform(k5, (n_features, n_hidden), jnp.float32, -lin_bound, lin_bound)
    lin_b = jax.random.uniform(k6, (n_features,), jnp.float32, -lin_bound, lin_bound)
    params["lin_w_t"] = lin_w.T                 # (H, F)
    params["lin_b"] = lin_b.reshape(1, -1)      # (1, F)
    return params


# ----------------------------------------------------------------------------
# Pure-JAX reference (correctness check)
# ----------------------------------------------------------------------------
def reference_forward(x_bsf, params):
    def one_layer(x_tm, layer):
        H = layer["whh_t"].shape[0]

        def step(carry, x_t):
            h, c = carry
            z = x_t @ layer["wih_t"] + h @ layer["whh_t"] + layer["b"]
            i = jax.nn.sigmoid(z[:, 0 * H:1 * H])
            f = jax.nn.sigmoid(z[:, 1 * H:2 * H])
            g = jnp.tanh(z[:, 2 * H:3 * H])
            o = jax.nn.sigmoid(z[:, 3 * H:4 * H])
            c = f * c + i * g
            h = o * jnp.tanh(c)
            return (h, c), h

        B = x_tm.shape[1]
        h0 = jnp.zeros((B, H), jnp.float32)
        (_, _), hs = jax.lax.scan(step, (h0, h0), x_tm)
        return hs

    x_tm = jnp.transpose(x_bsf, (1, 0, 2))
    h = x_tm
    for layer in params["lstm"]:
        h = one_layer(h, layer)
    y = jnp.tanh(h @ params["lin_w_t"] + params["lin_b"])
    return jnp.transpose(y, (1, 0, 2))


if __name__ == "__main__":
    n_features = 4
    n_hidden = 32
    batch = 2
    seq = 8

    key = jax.random.PRNGKey(0)
    key, xk = jax.random.split(key)
    x = jax.random.normal(xk, (batch, seq, n_features), jnp.float32)
    params = init_params(key, n_hidden, n_features)

    fwd = jax.jit(covid_lstm_forward)
    out = jax.block_until_ready(fwd(x, params))
    assert out.shape == (batch, seq, n_features), out.shape

    ref = jax.block_until_ready(reference_forward(x, params))
    max_err = float(jnp.max(jnp.abs(out - ref)))
    assert jnp.allclose(out, ref, rtol=1e-4, atol=1e-4), max_err

    print("KERNEL_OK")
</pallas_src>

<mosaic_0001>
module attributes {stable_mosaic.version = 11 : i64} {
  func.func @_covid_lstm_kernel(%arg0: memref<16x4xf32, #tpu.memory_space<vmem>>, %arg1: memref<4x128xf32, #tpu.memory_space<vmem>>, %arg2: memref<32x128xf32, #tpu.memory_space<vmem>>, %arg3: memref<1x128xf32, #tpu.memory_space<vmem>>, %arg4: memref<32x128xf32, #tpu.memory_space<vmem>>, %arg5: memref<32x128xf32, #tpu.memory_space<vmem>>, %arg6: memref<1x128xf32, #tpu.memory_space<vmem>>, %arg7: memref<32x128xf32, #tpu.memory_space<vmem>>, %arg8: memref<32x128xf32, #tpu.memory_space<vmem>>, %arg9: memref<1x128xf32, #tpu.memory_space<vmem>>, %arg10: memref<32x4xf32, #tpu.memory_space<vmem>>, %arg11: memref<1x4xf32, #tpu.memory_space<vmem>>, %arg12: memref<16x4xf32, #tpu.memory_space<vmem>>, %arg13: memref<16x32xf32, #tpu.memory_space<vmem>>) attributes {dimension_semantics = [], scalar_prefetch = 0 : i64, scratch_operands = 1 : i64, tpu.core_type = #tpu.core_type<tc>} {
    %c0 = arith.constant 0 : index
    %c0_0 = arith.constant 0 : index
    %0 = vector.load %arg0[%c0, %c0_0] : memref<16x4xf32, #tpu.memory_space<vmem>>, vector<16x4xf32>
    %c0_1 = arith.constant 0 : index
    %c0_2 = arith.constant 0 : index
    %1 = vector.load %arg1[%c0_1, %c0_2] : memref<4x128xf32, #tpu.memory_space<vmem>>, vector<4x128xf32>
    %cst = arith.constant dense<0.000000e+00> : vector<16x128xf32>
    %2 = tpu.matmul %0, %1, %cst {dimension_numbers = #tpu.dot_dimension_numbers<[1], [0], [0], [1], [0, 0, 1, 1], [], []>} : vector<16x4xf32>, vector<4x128xf32>, vector<16x128xf32> -> vector<16x128xf32>
    %c0_3 = arith.constant 0 : index
    %c0_4 = arith.constant 0 : index
    %3 = vector.load %arg3[%c0_3, %c0_4] : memref<1x128xf32, #tpu.memory_space<vmem>>, vector<1x128xf32>
    %4 = vector.broadcast %3 : vector<1x128xf32> to vector<16x128xf32>
    %5 = arith.addf %2, %4 : vector<16x128xf32>
    %c0_5 = arith.constant 0 : index
    %c0_6 = arith.constant 0 : index
    %6 = vector.load %arg2[%c0_5, %c0_6] : memref<32x128xf32, #tpu.memory_space<vmem>>, vector<32x128xf32>
    %cst_7 = arith.constant 0.000000e+00 : f32
    %7 = vector.broadcast %cst_7 : f32 to vector<2x32xf32>
    %cst_8 = arith.constant 0.000000e+00 : f32
    %8 = vector.broadcast %cst_8 : f32 to vector<2x32xf32>
    %9 = vector.extract_strided_slice %5 {offsets = [0, 0], sizes = [2, 128], strides = [1, 1]} : vector<16x128xf32> to vector<2x128xf32>
    %cst_9 = arith.constant dense<0.000000e+00> : vector<2x128xf32>
    %10 = tpu.matmul %7, %6, %cst_9 {dimension_numbers = #tpu.dot_dimension_numbers<[1], [0], [0], [1], [0, 0, 1, 1], [], []>} : vector<2x32xf32>, vector<32x128xf32>, vector<2x128xf32> -> vector<2x128xf32>
    %11 = arith.addf %9, %10 : vector<2x128xf32>
    %12 = arith.negf %11 : vector<2x128xf32>
    %13 = math.exp %12 : vector<2x128xf32>
    %cst_10 = arith.constant 1.000000e+00 : f32
    %14 = vector.broadcast %cst_10 : f32 to vector<2x128xf32>
    %15 = arith.addf %14, %13 : vector<2x128xf32>
    %16 = arith.divf %14, %15 : vector<2x128xf32>
    %17 = math.tanh %11 : vector<2x128xf32>
    %18 = vector.extract_strided_slice %16 {offsets = [0, 0], sizes = [2, 32], strides = [1, 1]} : vector<2x128xf32> to vector<2x32xf32>
    %19 = vector.extract_strided_slice %16 {offsets = [0, 32], sizes = [2, 32], strides = [1, 1]} : vector<2x128xf32> to vector<2x32xf32>
    %20 = vector.extract_strided_slice %17 {offsets = [0, 64], sizes = [2, 32], strides = [1, 1]} : vector<2x128xf32> to vector<2x32xf32>
    %21 = vector.extract_strided_slice %16 {offsets = [0, 96], sizes = [2, 32], strides = [1, 1]} : vector<2x128xf32> to vector<2x32xf32>
    %22 = arith.mulf %19, %8 : vector<2x32xf32>
    %23 = arith.mulf %18, %20 : vector<2x32xf32>
    %24 = arith.addf %22, %23 : vector<2x32xf32>
    %25 = math.tanh %24 : vector<2x32xf32>
    %26 = arith.mulf %21, %25 : vector<2x32xf32>
    %c0_11 = arith.constant 0 : index
    %c0_12 = arith.constant 0 : index
    %27 = vector.load %arg13[%c0_11, %c0_12] : memref<16x32xf32, #tpu.memory_space<vmem>>, vector<2x32xf32>
    tpu.vector_store %arg13[%c0_11, %c0_12], %26 {strides = array<i32>} : memref<16x32xf32, #tpu.memory_space<vmem>>, vector<2x32xf32>,
    %28 = vector.extract_strided_slice %5 {offsets = [2, 0], sizes = [2, 128], strides = [1, 1]} : vector<16x128xf32> to vector<2x128xf32>
    %cst_13 = arith.constant dense<0.000000e+00> : vector<2x128xf32>
    %29 = tpu.matmul %26, %6, %cst_13 {dimension_numbers = #tpu.dot_dimension_numbers<[1], [0], [0], [1], [0, 0, 1, 1], [], []>} : vector<2x32xf32>, vector<32x128xf32>, vector<2x128xf32> -> vector<2x128xf32>
    %30 = arith.addf %28, %29 : vector<2x128xf32>
    %31 = arith.negf %30 : vector<2x128xf32>
    %32 = math.exp %31 : vector<2x128xf32>
    %cst_14 = arith.constant 1.000000e+00 : f32
    %33 = vector.broadcast %cst_14 : f32 to vector<2x128xf32>
    %34 = arith.addf %33, %32 : vector<2x128xf32>
    %35 = arith.divf %33, %34 : vector<2x128xf32>
    %36 = math.tanh %30 : vector<2x128xf32>
    %37 = vector.extract_strided_slice %35 {offsets = [0, 0], sizes = [2, 32], strides = [1, 1]} : vector<2x128xf32> to vector<2x32xf32>
    %38 = vector.extract_strided_slice %35 {offsets = [0, 32], sizes = [2, 32], strides = [1, 1]} : vector<2x128xf32> to vector<2x32xf32>
    %39 = vector.extract_strided_slice %36 {offsets = [0, 64], sizes = [2, 32], strides = [1, 1]} : vector<2x128xf32> to vector<2x32xf32>
    %40 = vector.extract_strided_slice %35 {offsets = [0, 96], sizes = [2, 32], strides = [1, 1]} : vector<2x128xf32> to vector<2x32xf32>
    %41 = arith.mulf %38, %24 : vector<2x32xf32>
    %42 = arith.mulf %37, %39 : vector<2x32xf32>
    %43 = arith.addf %41, %42 : vector<2x32xf32>
    %44 = math.tanh %43 : vector<2x32xf32>
    %45 = arith.mulf %40, %44 : vector<2x32xf32>
    %c2 = arith.constant 2 : index
    %c0_15 = arith.constant 0 : index
    %46 = vector.load %arg13[%c2, %c0_15] : memref<16x32xf32, #tpu.memory_space<vmem>>, vector<2x32xf32>
    tpu.vector_store %arg13[%c2, %c0_15], %45 {strides = array<i32>} : memref<16x32xf32, #tpu.memory_space<vmem>>, vector<2x32xf32>,
    %47 = vector.extract_strided_slice %5 {offsets = [4, 0], sizes = [2, 128], strides = [1, 1]} : vector<16x128xf32> to vector<2x128xf32>
    %cst_16 = arith.constant dense<0.000000e+00> : vector<2x128xf32>
    %48 = tpu.matmul %45, %6, %cst_16 {dimension_numbers = #tpu.dot_dimension_numbers<[1], [0], [0], [1], [0, 0, 1, 1], [], []>} : vector<2x32xf32>, vector<32x128xf32>, vector<2x128xf32> -> vector<2x128xf32>
    %49 = arith.addf %47, %48 : vector<2x128xf32>
    %50 = arith.negf %49 : vector<2x128xf32>
    %51 = math.exp %50 : vector<2x128xf32>
    %cst_17 = arith.constant 1.000000e+00 : f32
    %52 = vector.broadcast %cst_17 : f32 to vector<2x128xf32>
    %53 = arith.addf %52, %51 : vector<2x128xf32>
    %54 = arith.divf %52, %53 : vector<2x128xf32>
    %55 = math.tanh %49 : vector<2x128xf32>
    %56 = vector.extract_strided_slice %54 {offsets = [0, 0], sizes = [2, 32], strides = [1, 1]} : vector<2x128xf32> to vector<2x32xf32>
    %57 = vector.extract_strided_slice %54 {offsets = [0, 32], sizes = [2, 32], strides = [1, 1]} : vector<2x128xf32> to vector<2x32xf32>
    %58 = vector.extract_strided_slice %55 {offsets = [0, 64], sizes = [2, 32], strides = [1, 1]} : vector<2x128xf32> to vector<2x32xf32>
    %59 = vector.extract_strided_slice %54 {offsets = [0, 96], sizes = [2, 32], strides = [1, 1]} : vector<2x128xf32> to vector<2x32xf32>
    %60 = arith.mulf %57, %43 : vector<2x32xf32>
    %61 = arith.mulf %56, %58 : vector<2x32xf32>
    %62 = arith.addf %60, %61 : vector<2x32xf32>
    %63 = math.tanh %62 : vector<2x32xf32>
    %64 = arith.mulf %59, %63 : vector<2x32xf32>
    %c4 = arith.constant 4 : index
    %c0_18 = arith.constant 0 : index
    %65 = vector.load %arg13[%c4, %c0_18] : memref<16x32xf32, #tpu.memory_space<vmem>>, vector<2x32xf32>
    tpu.vector_store %arg13[%c4, %c0_18], %64 {strides = array<i32>} : memref<16x32xf32, #tpu.memory_space<vmem>>, vector<2x32xf32>,
    %66 = vector.extract_strided_slice %5 {offsets = [6, 0], sizes = [2, 128], strides = [1, 1]} : vector<16x128xf32> to vector<2x128xf32>
    %cst_19 = arith.constant dense<0.000000e+00> : vector<2x128xf32>
    %67 = tpu.matmul %64, %6, %cst_19 {dimension_numbers = #tpu.dot_dimension_numbers<[1], [0], [0], [1], [0, 0, 1, 1], [], []>} : vector<2x32xf32>, vector<32x128xf32>, vector<2x128xf32> -> vector<2x128xf32>
    %68 = arith.addf %66, %67 : vector<2x128xf32>
    %69 = arith.negf %68 : vector<2x128xf32>
    %70 = math.exp %69 : vector<2x128xf32>
    %cst_20 = arith.constant 1.000000e+00 : f32
    %71 = vector.broadcast %cst_20 : f32 to vector<2x128xf32>
    %72 = arith.addf %71, %70 : vector<2x128xf32>
    %73 = arith.divf %71, %72 : vector<2x128xf32>
    %74 = math.tanh %68 : vector<2x128xf32>
    %75 = vector.extract_strided_slice %73 {offsets = [0, 0], sizes = [2, 32], strides = [1, 1]} : vector<2x128xf32> to vector<2x32xf32>
    %76 = vector.extract_strided_slice %73 {offsets = [0, 32], sizes = [2, 32], strides = [1, 1]} : vector<2x128xf32> to vector<2x32xf32>
    %77 = vector.extract_strided_slice %74 {offsets = [0, 64], sizes = [2, 32], strides = [1, 1]} : vector<2x128xf32> to vector<2x32xf32>
    %78 = vector.extract_strided_slice %73 {offsets = [0, 96], sizes = [2, 32], strides = [1, 1]} : vector<2x128xf32> to vector<2x32xf32>
    %79 = arith.mulf %76, %62 : vector<2x32xf32>
    %80 = arith.mulf %75, %77 : vector<2x32xf32>
    %81 = arith.addf %79, %80 : vector<2x32xf32>
    %82 = math.tanh %81 : vector<2x32xf32>
    %83 = arith.mulf %78, %82 : vector<2x32xf32>
    %c6 = arith.constant 6 : index
    %c0_21 = arith.constant 0 : index
    %84 = vector.load %arg13[%c6, %c0_21] : memref<16x32xf32, #tpu.memory_space<vmem>>, vector<2x32xf32>
    tpu.vector_store %arg13[%c6, %c0_21], %83 {strides = array<i32>} : memref<16x32xf32, #tpu.memory_space<vmem>>, vector<2x32xf32>,
    %85 = vector.extract_strided_slice %5 {offsets = [8, 0], sizes = [2, 128], strides = [1, 1]} : vector<16x128xf32> to vector<2x128xf32>
    %cst_22 = arith.constant dense<0.000000e+00> : vector<2x128xf32>
    %86 = tpu.matmul %83, %6, %cst_22 {dimension_numbers = #tpu.dot_dimension_numbers<[1], [0], [0], [1], [0, 0, 1, 1], [], []>} : vector<2x32xf32>, vector<32x128xf32>, vector<2x128xf32> -> vector<2x128xf32>
    %87 = arith.addf %85, %86 : vector<2x128xf32>
    %88 = arith.negf %87 : vector<2x128xf32>
    %89 = math.exp %88 : vector<2x128xf32>
    %cst_23 = arith.constant 1.000000e+00 : f32
    %90 = vector.broadcast %cst_23 : f32 to vector<2x128xf32>
    %91 = arith.addf %90, %89 : vector<2x128xf32>
    %92 = arith.divf %90, %91 : vector<2x128xf32>
    %93 = math.tanh %87 : vector<2x128xf32>
    %94 = vector.extract_strided_slice %92 {offsets = [0, 0], sizes = [2, 32], strides = [1, 1]} : vector<2x128xf32> to vector<2x32xf32>
    %95 = vector.extract_strided_slice %92 {offsets = [0, 32], sizes = [2, 32], strides = [1, 1]} : vector<2x128xf32> to vector<2x32xf32>
    %96 = vector.extract_strided_slice %93 {offsets = [0, 64], sizes = [2, 32], strides = [1, 1]} : vector<2x128xf32> to vector<2x32xf32>
    %97 = vector.extract_strided_slice %92 {offsets = [0, 96], sizes = [2, 32], strides = [1, 1]} : vector<2x128xf32> to vector<2x32xf32>
    %98 = arith.mulf %95, %81 : vector<2x32xf32>
    %99 = arith.mulf %94, %96 : vector<2x32xf32>
    %100 = arith.addf %98, %99 : vector<2x32xf32>
    %101 = math.tanh %100 : vector<2x32xf32>
    %102 = arith.mulf %97, %101 : vector<2x32xf32>
    %c8 = arith.constant 8 : index
    %c0_24 = arith.constant 0 : index
    %103 = vector.load %arg13[%c8, %c0_24] : memref<16x32xf32, #tpu.memory_space<vmem>>, vector<2x32xf32>
    tpu.vector_store %arg13[%c8, %c0_24], %102 {strides = array<i32>} : memref<16x32xf32, #tpu.memory_space<vmem>>, vector<2x32xf32>,
    %104 = vector.extract_strided_slice %5 {offsets = [10, 0], sizes = [2, 128], strides = [1, 1]} : vector<16x128xf32> to vector<2x128xf32>
    %cst_25 = arith.constant dense<0.000000e+00> : vector<2x128xf32>
    %105 = tpu.matmul %102, %6, %cst_25 {dimension_numbers = #tpu.dot_dimension_numbers<[1], [0], [0], [1], [0, 0, 1, 1], [], []>} : vector<2x32xf32>, vector<32x128xf32>, vector<2x128xf32> -> vector<2x128xf32>
    %106 = arith.addf %104, %105 : vector<2x128xf32>
    %107 = arith.negf %106 : vector<2x128xf32>
    %108 = math.exp %107 : vector<2x128xf32>
    %cst_26 = arith.constant 1.000000e+00 : f32
    %109 = vector.broadcast %cst_26 : f32 to vector<2x128xf32>
    %110 = arith.addf %109, %108 : vector<2x128xf32>
    %111 = arith.divf %109, %110 : vector<2x128xf32>
    %112 = math.tanh %106 : vector<2x128xf32>
    %113 = vector.extract_strided_slice %111 {offsets = [0, 0], sizes = [2, 32], strides = [1, 1]} : vector<2x128xf32> to vector<2x32xf32>
    %114 = vector.extract_strided_slice %111 {offsets = [0, 32], sizes = [2, 32], strides = [1, 1]} : vector<2x128xf32> to vector<2x32xf32>
    %115 = vector.extract_strided_slice %112 {offsets = [0, 64], sizes = [2, 32], strides = [1, 1]} : vector<2x128xf32> to vector<2x32xf32>
    %116 = vector.extract_strided_slice %111 {offsets = [0, 96], sizes = [2, 32], strides = [1, 1]} : vector<2x128xf32> to vector<2x32xf32>
    %117 = arith.mulf %114, %100 : vector<2x32xf32>
    %118 = arith.mulf %113, %115 : vector<2x32xf32>
    %119 = arith.addf %117, %118 : vector<2x32xf32>
    %120 = math.tanh %119 : vector<2x32xf32>
    %121 = arith.mulf %116, %120 : vector<2x32xf32>
    %c10 = arith.constant 10 : index
    %c0_27 = arith.constant 0 : index
    %122 = vector.load %arg13[%c10, %c0_27] : memref<16x32xf32, #tpu.memory_space<vmem>>, vector<2x32xf32>
    tpu.vector_store %arg13[%c10, %c0_27], %121 {strides = array<i32>} : memref<16x32xf32, #tpu.memory_space<vmem>>, vector<2x32xf32>,
    %123 = vector.extract_strided_slice %5 {offsets = [12, 0], sizes = [2, 128], strides = [1, 1]} : vector<16x128xf32> to vector<2x128xf32>
    %cst_28 = arith.constant dense<0.000000e+00> : vector<2x128xf32>
    %124 = tpu.matmul %121, %6, %cst_28 {dimension_numbers = #tpu.dot_dimension_numbers<[1], [0], [0], [1], [0, 0, 1, 1], [], []>} : vector<2x32xf32>, vector<32x128xf32>, vector<2x128xf32> -> vector<2x128xf32>
    %125 = arith.addf %123, %124 : vector<2x128xf32>
    %126 = arith.negf %125 : vector<2x128xf32>
    %127 = math.exp %126 : vector<2x128xf32>
    %cst_29 = arith.constant 1.000000e+00 : f32
    %128 = vector.broadcast %cst_29 : f32 to vector<2x128xf32>
    %129 = arith.addf %128, %127 : vector<2x128xf32>
    %130 = arith.divf %128, %129 : vector<2x128xf32>
    %131 = math.tanh %125 : vector<2x128xf32>
    %132 = vector.extract_strided_slice %130 {offsets = [0, 0], sizes = [2, 32], strides = [1, 1]} : vector<2x128xf32> to vector<2x32xf32>
    %133 = vector.extract_strided_slice %130 {offsets = [0, 32], sizes = [2, 32], strides = [1, 1]} : vector<2x128xf32> to vector<2x32xf32>
    %134 = vector.extract_strided_slice %131 {offsets = [0, 64], sizes = [2, 32], strides = [1, 1]} : vector<2x128xf32> to vector<2x32xf32>
    %135 = vector.extract_strided_slice %130 {offsets = [0, 96], sizes = [2, 32], strides = [1, 1]} : vector<2x128xf32> to vector<2x32xf32>
    %136 = arith.mulf %133, %119 : vector<2x32xf32>
    %137 = arith.mulf %132, %134 : vector<2x32xf32>
    %138 = arith.addf %136, %137 : vector<2x32xf32>
    %139 = math.tanh %138 : vector<2x32xf32>
    %140 = arith.mulf %135, %139 : vector<2x32xf32>
    %c12 = arith.constant 12 : index
    %c0_30 = arith.constant 0 : index
    %141 = vector.load %arg13[%c12, %c0_30] : memref<16x32xf32, #tpu.memory_space<vmem>>, vector<2x32xf32>
    tpu.vector_store %arg13[%c12, %c0_30], %140 {strides = array<i32>} : memref<16x32xf32, #tpu.memory_space<vmem>>, vector<2x32xf32>,
    %142 = vector.extract_strided_slice %5 {offsets = [14, 0], sizes = [2, 128], strides = [1, 1]} : vector<16x128xf32> to vector<2x128xf32>
    %cst_31 = arith.constant dense<0.000000e+00> : vector<2x128xf32>
    %143 = tpu.matmul %140, %6, %cst_31 {dimension_numbers = #tpu.dot_dimension_numbers<[1], [0], [0], [1], [0, 0, 1, 1], [], []>} : vector<2x32xf32>, vector<32x128xf32>, vector<2x128xf32> -> vector<2x128xf32>
    %144 = arith.addf %142, %143 : vector<2x128xf32>
    %145 = arith.negf %144 : vector<2x128xf32>
    %146 = math.exp %145 : vector<2x128xf32>
    %cst_32 = arith.constant 1.000000e+00 : f32
    %147 = vector.broadcast %cst_32 : f32 to vector<2x128xf32>
    %148 = arith.addf %147, %146 : vector<2x128xf32>
    %149 = arith.divf %147, %148 : vector<2x128xf32>
    %150 = math.tanh %144 : vector<2x128xf32>
    %151 = vector.extract_strided_slice %149 {offsets = [0, 0], sizes = [2, 32], strides = [1, 1]} : vector<2x128xf32> to vector<2x32xf32>
    %152 = vector.extract_strided_slice %149 {offsets = [0, 32], sizes = [2, 32], strides = [1, 1]} : vector<2x128xf32> to vector<2x32xf32>
    %153 = vector.extract_strided_slice %150 {offsets = [0, 64], sizes = [2, 32], strides = [1, 1]} : vector<2x128xf32> to vector<2x32xf32>
    %154 = vector.extract_strided_slice %149 {offsets = [0, 96], sizes = [2, 32], strides = [1, 1]} : vector<2x128xf32> to vector<2x32xf32>
    %155 = arith.mulf %152, %138 : vector<2x32xf32>
    %156 = arith.mulf %151, %153 : vector<2x32xf32>
    %157 = arith.addf %155, %156 : vector<2x32xf32>
    %158 = math.tanh %157 : vector<2x32xf32>
    %159 = arith.mulf %154, %158 : vector<2x32xf32>
    %c14 = arith.constant 14 : index
    %c0_33 = arith.constant 0 : index
    %160 = vector.load %arg13[%c14, %c0_33] : memref<16x32xf32, #tpu.memory_space<vmem>>, vector<2x32xf32>
    tpu.vector_store %arg13[%c14, %c0_33], %159 {strides = array<i32>} : memref<16x32xf32, #tpu.memory_space<vmem>>, vector<2x32xf32>,
    %c0_34 = arith.constant 0 : index
    %c0_35 = arith.constant 0 : index
    %161 = vector.load %arg13[%c0_34, %c0_35] : memref<16x32xf32, #tpu.memory_space<vmem>>, vector<16x32xf32>
    %c0_36 = arith.constant 0 : index
    %c0_37 = arith.constant 0 : index
    %162 = vector.load %arg4[%c0_36, %c0_37] : memref<32x128xf32, #tpu.memory_space<vmem>>, vector<32x128xf32>
    %cst_38 = arith.constant dense<0.000000e+00> : vector<16x128xf32>
    %163 = tpu.matmul %161, %162, %cst_38 {dimension_numbers = #tpu.dot_dimension_numbers<[1], [0], [0], [1], [0, 0, 1, 1], [], []>} : vector<16x32xf32>, vector<32x128xf32>, vector<16x128xf32> -> vector<16x128xf32>
    %c0_39 = arith.constant 0 : index
    %c0_40 = arith.constant 0 : index
    %164 = vector.load %arg6[%c0_39, %c0_40] : memref<1x128xf32, #tpu.memory_space<vmem>>, vector<1x128xf32>
    %165 = vector.broadcast %164 : vector<1x128xf32> to vector<16x128xf32>
    %166 = arith.addf %163, %165 : vector<16x128xf32>
    %c0_41 = arith.constant 0 : index
    %c0_42 = arith.constant 0 : index
    %167 = vector.load %arg5[%c0_41, %c0_42] : memref<32x128xf32, #tpu.memory_space<vmem>>, vector<32x128xf32>
    %cst_43 = arith.constant 0.000000e+00 : f32
    %168 = vector.broadcast %cst_43 : f32 to vector<2x32xf32>
    %cst_44 = arith.constant 0.000000e+00 : f32
    %169 = vector.broadcast %cst_44 : f32 to vector<2x32xf32>
    %170 = vector.extract_strided_slice %166 {offsets = [0, 0], sizes = [2, 128], strides = [1, 1]} : vector<16x128xf32> to vector<2x128xf32>
    %cst_45 = arith.constant dense<0.000000e+00> : vector<2x128xf32>
    %171 = tpu.matmul %168, %167, %cst_45 {dimension_numbers = #tpu.dot_dimension_numbers<[1], [0], [0], [1], [0, 0, 1, 1], [], []>} : vector<2x32xf32>, vector<32x128xf32>, vector<2x128xf32> -> vector<2x128xf32>
    %172 = arith.addf %170, %171 : vector<2x128xf32>
    %173 = arith.negf %172 : vector<2x128xf32>
    %174 = math.exp %173 : vector<2x128xf32>
    %cst_46 = arith.constant 1.000000e+00 : f32
    %175 = vector.broadcast %cst_46 : f32 to vector<2x128xf32>
    %176 = arith.addf %175, %174 : vector<2x128xf32>
    %177 = arith.divf %175, %176 : vector<2x128xf32>
    %178 = math.tanh %172 : vector<2x128xf32>
    %179 = vector.extract_strided_slice %177 {offsets = [0, 0], sizes = [2, 32], strides = [1, 1]} : vector<2x128xf32> to vector<2x32xf32>
    %180 = vector.extract_strided_slice %177 {offsets = [0, 32], sizes = [2, 32], strides = [1, 1]} : vector<2x128xf32> to vector<2x32xf32>
    %181 = vector.extract_strided_slice %178 {offsets = [0, 64], sizes = [2, 32], strides = [1, 1]} : vector<2x128xf32> to vector<2x32xf32>
    %182 = vector.extract_strided_slice %177 {offsets = [0, 96], sizes = [2, 32], strides = [1, 1]} : vector<2x128xf32> to vector<2x32xf32>
    %183 = arith.mulf %180, %169 : vector<2x32xf32>
    %184 = arith.mulf %179, %181 : vector<2x32xf32>
    %185 = arith.addf %183, %184 : vector<2x32xf32>
    %186 = math.tanh %185 : vector<2x32xf32>
    %187 = arith.mulf %182, %186 : vector<2x32xf32>
    %c0_47 = arith.constant 0 : index
    %c0_48 = arith.constant 0 : index
    %188 = vector.load %arg13[%c0_47, %c0_48] : memref<16x32xf32, #tpu.memory_space<vmem>>, vector<2x32xf32>
    tpu.vector_store %arg13[%c0_47, %c0_48], %187 {strides = array<i32>} : memref<16x32xf32, #tpu.memory_space<vmem>>, vector<2x32xf32>,
    %189 = vector.extract_strided_slice %166 {offsets = [2, 0], sizes = [2, 128], strides = [1, 1]} : vector<16x128xf32> to vector<2x128xf32>
    %cst_49 = arith.constant dense<0.000000e+00> : vector<2x128xf32>
    %190 = tpu.matmul %187, %167, %cst_49 {dimension_numbers = #tpu.dot_dimension_numbers<[1], [0], [0], [1], [0, 0, 1, 1], [], []>} : vector<2x32xf32>, vector<32x128xf32>, vector<2x128xf32> -> vector<2x128xf32>
    %191 = arith.addf %189, %190 : vector<2x128xf32>
    %192 = arith.negf %191 : vector<2x128xf32>
    %193 = math.exp %192 : vector<2x128xf32>
    %cst_50 = arith.constant 1.000000e+00 : f32
    %194 = vector.broadcast %cst_50 : f32 to vector<2x128xf32>
    %195 = arith.addf %194, %193 : vector<2x128xf32>
    %196 = arith.divf %194, %195 : vector<2x128xf32>
    %197 = math.tanh %191 : vector<2x128xf32>
    %198 = vector.extract_strided_slice %196 {offsets = [0, 0], sizes = [2, 32], strides = [1, 1]} : vector<2x128xf32> to vector<2x32xf32>
    %199 = vector.extract_strided_slice %196 {offsets = [0, 32], sizes = [2, 32], strides = [1, 1]} : vector<2x128xf32> to vector<2x32xf32>
    %200 = vector.extract_strided_slice %197 {offsets = [0, 64], sizes = [2, 32], strides = [1, 1]} : vector<2x128xf32> to vector<2x32xf32>
    %201 = vector.extract_strided_slice %196 {offsets = [0, 96], sizes = [2, 32], strides = [1, 1]} : vector<2x128xf32> to vector<2x32xf32>
    %202 = arith.mulf %199, %185 : vector<2x32xf32>
    %203 = arith.mulf %198, %200 : vector<2x32xf32>
    %204 = arith.addf %202, %203 : vector<2x32xf32>
    %205 = math.tanh %204 : vector<2x32xf32>
    %206 = arith.mulf %201, %205 : vector<2x32xf32>
    %c2_51 = arith.constant 2 : index
    %c0_52 = arith.constant 0 : index
    %207 = vector.load %arg13[%c2_51, %c0_52] : memref<16x32xf32, #tpu.memory_space<vmem>>, vector<2x32xf32>
    tpu.vector_store %arg13[%c2_51, %c0_52], %206 {strides = array<i32>} : memref<16x32xf32, #tpu.memory_space<vmem>>, vector<2x32xf32>,
    %208 = vector.extract_strided_slice %166 {offsets = [4, 0], sizes = [2, 128], strides = [1, 1]} : vector<16x128xf32> to vector<2x128xf32>
    %cst_53 = arith.constant dense<0.000000e+00> : vector<2x128xf32>
    %209 = tpu.matmul %206, %167, %cst_53 {dimension_numbers = #tpu.dot_dimension_numbers<[1], [0], [0], [1], [0, 0, 1, 1], [], []>} : vector<2x32xf32>, vector<32x128xf32>, vector<2x128xf32> -> vector<2x128xf32>
    %210 = arith.addf %208, %209 : vector<2x128xf32>
    %211 = arith.negf %210 : vector<2x128xf32>
    %212 = math.exp %211 : vector<2x128xf32>
    %cst_54 = arith.constant 1.000000e+00 : f32
    %213 = vector.broadcast %cst_54 : f32 to vector<2x128xf32>
    %214 = arith.addf %213, %212 : vector<2x128xf32>
    %215 = arith.divf %213, %214 : vector<2x128xf32>
    %216 = math.tanh %210 : vector<2x128xf32>
    %217 = vector.extract_strided_slice %215 {offsets = [0, 0], sizes = [2, 32], strides = [1, 1]} : vector<2x128xf32> to vector<2x32xf32>
    %218 = vector.extract_strided_slice %215 {offsets = [0, 32], sizes = [2, 32], strides = [1, 1]} : vector<2x128xf32> to vector<2x32xf32>
    %219 = vector.extract_strided_slice %216 {offsets = [0, 64], sizes = [2, 32], strides = [1, 1]} : vector<2x128xf32> to vector<2x32xf32>
    %220 = vector.extract_strided_slice %215 {offsets = [0, 96], sizes = [2, 32], strides = [1, 1]} : vector<2x128xf32> to vector<2x32xf32>
    %221 = arith.mulf %218, %204 : vector<2x32xf32>
    %222 = arith.mulf %217, %219 : vector<2x32xf32>
    %223 = arith.addf %221, %222 : vector<2x32xf32>
    %224 = math.tanh %223 : vector<2x32xf32>
    %225 = arith.mulf %220, %224 : vector<2x32xf32>
    %c4_55 = arith.constant 4 : index
    %c0_56 = arith.constant 0 : index
    %226 = vector.load %arg13[%c4_55, %c0_56] : memref<16x32xf32, #tpu.memory_space<vmem>>, vector<2x32xf32>
    tpu.vector_store %arg13[%c4_55, %c0_56], %225 {strides = array<i32>} : memref<16x32xf32, #tpu.memory_space<vmem>>, vector<2x32xf32>,
    %227 = vector.extract_strided_slice %166 {offsets = [6, 0], sizes = [2, 128], strides = [1, 1]} : vector<16x128xf32> to vector<2x128xf32>
    %cst_57 = arith.constant dense<0.000000e+00> : vector<2x128xf32>
    %228 = tpu.matmul %225, %167, %cst_57 {dimension_numbers = #tpu.dot_dimension_numbers<[1], [0], [0], [1], [0, 0, 1, 1], [], []>} : vector<2x32xf32>, vector<32x128xf32>, vector<2x128xf32> -> vector<2x128xf32>
    %229 = arith.addf %227, %228 : vector<2x128xf32>
    %230 = arith.negf %229 : vector<2x128xf32>
    %231 = math.exp %230 : vector<2x128xf32>
    %cst_58 = arith.constant 1.000000e+00 : f32
    %232 = vector.broadcast %cst_58 : f32 to vector<2x128xf32>
    %233 = arith.addf %232, %231 : vector<2x128xf32>
    %234 = arith.divf %232, %233 : vector<2x128xf32>
    %235 = math.tanh %229 : vector<2x128xf32>
    %236 = vector.extract_strided_slice %234 {offsets = [0, 0], sizes = [2, 32], strides = [1, 1]} : vector<2x128xf32> to vector<2x32xf32>
    %237 = vector.extract_strided_slice %234 {offsets = [0, 32], sizes = [2, 32], strides = [1, 1]} : vector<2x128xf32> to vector<2x32xf32>
    %238 = vector.extract_strided_slice %235 {offsets = [0, 64], sizes = [2, 32], strides = [1, 1]} : vector<2x128xf32> to vector<2x32xf32>
    %239 = vector.extract_strided_slice %234 {offsets = [0, 96], sizes = [2, 32], strides = [1, 1]} : vector<2x128xf32> to vector<2x32xf32>
    %240 = arith.mulf %237, %223 : vector<2x32xf32>
    %241 = arith.mulf %236, %238 : vector<2x32xf32>
    %242 = arith.addf %240, %241 : vector<2x32xf32>
    %243 = math.tanh %242 : vector<2x32xf32>
    %244 = arith.mulf %239, %243 : vector<2x32xf32>
    %c6_59 = arith.constant 6 : index
    %c0_60 = arith.constant 0 : index
    %245 = vector.load %arg13[%c6_59, %c0_60] : memref<16x32xf32, #tpu.memory_space<vmem>>, vector<2x32xf32>
    tpu.vector_store %arg13[%c6_59, %c0_60], %244 {strides = array<i32>} : memref<16x32xf32, #tpu.memory_space<vmem>>, vector<2x32xf32>,
    %246 = vector.extract_strided_slice %166 {offsets = [8, 0], sizes = [2, 128], strides = [1, 1]} : vector<16x128xf32> to vector<2x128xf32>
    %cst_61 = arith.constant dense<0.000000e+00> : vector<2x128xf32>
    %247 = tpu.matmul %244, %167, %cst_61 {dimension_numbers = #tpu.dot_dimension_numbers<[1], [0], [0], [1], [0, 0, 1, 1], [], []>} : vector<2x32xf32>, vector<32x128xf32>, vector<2x128xf32> -> vector<2x128xf32>
    %248 = arith.addf %246, %247 : vector<2x128xf32>
    %249 = arith.negf %248 : vector<2x128xf32>
    %250 = math.exp %249 : vector<2x128xf32>
    %cst_62 = arith.constant 1.000000e+00 : f32
    %251 = vector.broadcast %cst_62 : f32 to vector<2x128xf32>
    %252 = arith.addf %251, %250 : vector<2x128xf32>
    %253 = arith.divf %251, %252 : vector<2x128xf32>
    %254 = math.tanh %248 : vector<2x128xf32>
    %255 = vector.extract_strided_slice %253 {offsets = [0, 0], sizes = [2, 32], strides = [1, 1]} : vector<2x128xf32> to vector<2x32xf32>
    %256 = vector.extract_strided_slice %253 {offsets = [0, 32], sizes = [2, 32], strides = [1, 1]} : vector<2x128xf32> to vector<2x32xf32>
    %257 = vector.extract_strided_slice %254 {offsets = [0, 64], sizes = [2, 32], strides = [1, 1]} : vector<2x128xf32> to vector<2x32xf32>
    %258 = vector.extract_strided_slice %253 {offsets = [0, 96], sizes = [2, 32], strides = [1, 1]} : vector<2x128xf32> to vector<2x32xf32>
    %259 = arith.mulf %256, %242 : vector<2x32xf32>
    %260 = arith.mulf %255, %257 : vector<2x32xf32>
    %261 = arith.addf %259, %260 : vector<2x32xf32>
    %262 = math.tanh %261 : vector<2x32xf32>
    %263 = arith.mulf %258, %262 : vector<2x32xf32>
    %c8_63 = arith.constant 8 : index
    %c0_64 = arith.constant 0 : index
    %264 = vector.load %arg13[%c8_63, %c0_64] : memref<16x32xf32, #tpu.memory_space<vmem>>, vector<2x32xf32>
    tpu.vector_store %arg13[%c8_63, %c0_64], %263 {strides = array<i32>} : memref<16x32xf32, #tpu.memory_space<vmem>>, vector<2x32xf32>,
    %265 = vector.extract_strided_slice %166 {offsets = [10, 0], sizes = [2, 128], strides = [1, 1]} : vector<16x128xf32> to vector<2x128xf32>
    %cst_65 = arith.constant dense<0.000000e+00> : vector<2x128xf32>
    %266 = tpu.matmul %263, %167, %cst_65 {dimension_numbers = #tpu.dot_dimension_numbers<[1], [0], [0], [1], [0, 0, 1, 1], [], []>} : vector<2x32xf32>, vector<32x128xf32>, vector<2x128xf32> -> vector<2x128xf32>
    %267 = arith.addf %265, %266 : vector<2x128xf32>
    %268 = arith.negf %267 : vector<2x128xf32>
    %269 = math.exp %268 : vector<2x128xf32>
    %cst_66 = arith.constant 1.000000e+00 : f32
    %270 = vector.broadcast %cst_66 : f32 to vector<2x128xf32>
    %271 = arith.addf %270, %269 : vector<2x128xf32>
    %272 = arith.divf %270, %271 : vector<2x128xf32>
    %273 = math.tanh %267 : vector<2x128xf32>
    %274 = vector.extract_strided_slice %272 {offsets = [0, 0], sizes = [2, 32], strides = [1, 1]} : vector<2x128xf32> to vector<2x32xf32>
    %275 = vector.extract_strided_slice %272 {offsets = [0, 32], sizes = [2, 32], strides = [1, 1]} : vector<2x128xf32> to vector<2x32xf32>
    %276 = vector.extract_strided_slice %273 {offsets = [0, 64], sizes = [2, 32], strides = [1, 1]} : vector<2x128xf32> to vector<2x32xf32>
    %277 = vector.extract_strided_slice %272 {offsets = [0, 96], sizes = [2, 32], strides = [1, 1]} : vector<2x128xf32> to vector<2x32xf32>
    %278 = arith.mulf %275, %261 : vector<2x32xf32>
    %279 = arith.mulf %274, %276 : vector<2x32xf32>
    %280 = arith.addf %278, %279 : vector<2x32xf32>
    %281 = math.tanh %280 : vector<2x32xf32>
    %282 = arith.mulf %277, %281 : vector<2x32xf32>
    %c10_67 = arith.constant 10 : index
    %c0_68 = arith.constant 0 : index
    %283 = vector.load %arg13[%c10_67, %c0_68] : memref<16x32xf32, #tpu.memory_space<vmem>>, vector<2x32xf32>
    tpu.vector_store %arg13[%c10_67, %c0_68], %282 {strides = array<i32>} : memref<16x32xf32, #tpu.memory_space<vmem>>, vector<2x32xf32>,
    %284 = vector.extract_strided_slice %166 {offsets = [12, 0], sizes = [2, 128], strides = [1, 1]} : vector<16x128xf32> to vector<2x128xf32>
    %cst_69 = arith.constant dense<0.000000e+00> : vector<2x128xf32>
    %285 = tpu.matmul %282, %167, %cst_69 {dimension_numbers = #tpu.dot_dimension_numbers<[1], [0], [0], [1], [0, 0, 1, 1], [], []>} : vector<2x32xf32>, vector<32x128xf32>, vector<2x128xf32> -> vector<2x128xf32>
    %286 = arith.addf %284, %285 : vector<2x128xf32>
    %287 = arith.negf %286 : vector<2x128xf32>
    %288 = math.exp %287 : vector<2x128xf32>
    %cst_70 = arith.constant 1.000000e+00 : f32
    %289 = vector.broadcast %cst_70 : f32 to vector<2x128xf32>
    %290 = arith.addf %289, %288 : vector<2x128xf32>
    %291 = arith.divf %289, %290 : vector<2x128xf32>
    %292 = math.tanh %286 : vector<2x128xf32>
    %293 = vector.extract_strided_slice %291 {offsets = [0, 0], sizes = [2, 32], strides = [1, 1]} : vector<2x128xf32> to vector<2x32xf32>
    %294 = vector.extract_strided_slice %291 {offsets = [0, 32], sizes = [2, 32], strides = [1, 1]} : vector<2x128xf32> to vector<2x32xf32>
    %295 = vector.extract_strided_slice %292 {offsets = [0, 64], sizes = [2, 32], strides = [1, 1]} : vector<2x128xf32> to vector<2x32xf32>
    %296 = vector.extract_strided_slice %291 {offsets = [0, 96], sizes = [2, 32], strides = [1, 1]} : vector<2x128xf32> to vector<2x32xf32>
    %297 = arith.mulf %294, %280 : vector<2x32xf32>
    %298 = arith.mulf %293, %295 : vector<2x32xf32>
    %299 = arith.addf %297, %298 : vector<2x32xf32>
    %300 = math.tanh %299 : vector<2x32xf32>
    %301 = arith.mulf %296, %300 : vector<2x32xf32>
    %c12_71 = arith.constant 12 : index
    %c0_72 = arith.constant 0 : index
    %302 = vector.load %arg13[%c12_71, %c0_72] : memref<16x32xf32, #tpu.memory_space<vmem>>, vector<2x32xf32>
    tpu.vector_store %arg13[%c12_71, %c0_72], %301 {strides = array<i32>} : memref<16x32xf32, #tpu.memory_space<vmem>>, vector<2x32xf32>,
    %303 = vector.extract_strided_slice %166 {offsets = [14, 0], sizes = [2, 128], strides = [1, 1]} : vector<16x128xf32> to vector<2x128xf32>
    %cst_73 = arith.constant dense<0.000000e+00> : vector<2x128xf32>
    %304 = tpu.matmul %301, %167, %cst_73 {dimension_numbers = #tpu.dot_dimension_numbers<[1], [0], [0], [1], [0, 0, 1, 1], [], []>} : vector<2x32xf32>, vector<32x128xf32>, vector<2x128xf32> -> vector<2x128xf32>
    %305 = arith.addf %303, %304 : vector<2x128xf32>
    %306 = arith.negf %305 : vector<2x128xf32>
    %307 = math.exp %306 : vector<2x128xf32>
    %cst_74 = arith.constant 1.000000e+00 : f32
    %308 = vector.broadcast %cst_74 : f32 to vector<2x128xf32>
    %309 = arith.addf %308, %307 : vector<2x128xf32>
    %310 = arith.divf %308, %309 : vector<2x128xf32>
    %311 = math.tanh %305 : vector<2x128xf32>
    %312 = vector.extract_strided_slice %310 {offsets = [0, 0], sizes = [2, 32], strides = [1, 1]} : vector<2x128xf32> to vector<2x32xf32>
    %313 = vector.extract_strided_slice %310 {offsets = [0, 32], sizes = [2, 32], strides = [1, 1]} : vector<2x128xf32> to vector<2x32xf32>
    %314 = vector.extract_strided_slice %311 {offsets = [0, 64], sizes = [2, 32], strides = [1, 1]} : vector<2x128xf32> to vector<2x32xf32>
    %315 = vector.extract_strided_slice %310 {offsets = [0, 96], sizes = [2, 32], strides = [1, 1]} : vector<2x128xf32> to vector<2x32xf32>
    %316 = arith.mulf %313, %299 : vector<2x32xf32>
    %317 = arith.mulf %312, %314 : vector<2x32xf32>
    %318 = arith.addf %316, %317 : vector<2x32xf32>
    %319 = math.tanh %318 : vector<2x32xf32>
    %320 = arith.mulf %315, %319 : vector<2x32xf32>
    %c14_75 = arith.constant 14 : index
    %c0_76 = arith.constant 0 : index
    %321 = vector.load %arg13[%c14_75, %c0_76] : memref<16x32xf32, #tpu.memory_space<vmem>>, vector<2x32xf32>
    tpu.vector_store %arg13[%c14_75, %c0_76], %320 {strides = array<i32>} : memref<16x32xf32, #tpu.memory_space<vmem>>, vector<2x32xf32>,
    %c0_77 = arith.constant 0 : index
    %c0_78 = arith.constant 0 : index
    %322 = vector.load %arg13[%c0_77, %c0_78] : memref<16x32xf32, #tpu.memory_space<vmem>>, vector<16x32xf32>
    %c0_79 = arith.constant 0 : index
    %c0_80 = arith.constant 0 : index
    %323 = vector.load %arg7[%c0_79, %c0_80] : memref<32x128xf32, #tpu.memory_space<vmem>>, vector<32x128xf32>
    %cst_81 = arith.constant dense<0.000000e+00> : vector<16x128xf32>
    %324 = tpu.matmul %322, %323, %cst_81 {dimension_numbers = #tpu.dot_dimension_numbers<[1], [0], [0], [1], [0, 0, 1, 1], [], []>} : vector<16x32xf32>, vector<32x128xf32>, vector<16x128xf32> -> vector<16x128xf32>
    %c0_82 = arith.constant 0 : index
    %c0_83 = arith.constant 0 : index
    %325 = vector.load %arg9[%c0_82, %c0_83] : memref<1x128xf32, #tpu.memory_space<vmem>>, vector<1x128xf32>
    %326 = vector.broadcast %325 : vector<1x128xf32> to vector<16x128xf32>
    %327 = arith.addf %324, %326 : vector<16x128xf32>
    %c0_84 = arith.constant 0 : index
    %c0_85 = arith.constant 0 : index
    %328 = vector.load %arg8[%c0_84, %c0_85] : memref<32x128xf32, #tpu.memory_space<vmem>>, vector<32x128xf32>
    %cst_86 = arith.constant 0.000000e+00 : f32
    %329 = vector.broadcast %cst_86 : f32 to vector<2x32xf32>
    %cst_87 = arith.constant 0.000000e+00 : f32
    %330 = vector.broadcast %cst_87 : f32 to vector<2x32xf32>
    %331 = vector.extract_strided_slice %327 {offsets = [0, 0], sizes = [2, 128], strides = [1, 1]} : vector<16x128xf32> to vector<2x128xf32>
    %cst_88 = arith.constant dense<0.000000e+00> : vector<2x128xf32>
    %332 = tpu.matmul %329, %328, %cst_88 {dimension_numbers = #tpu.dot_dimension_numbers<[1], [0], [0], [1], [0, 0, 1, 1], [], []>} : vector<2x32xf32>, vector<32x128xf32>, vector<2x128xf32> -> vector<2x128xf32>
    %333 = arith.addf %331, %332 : vector<2x128xf32>
    %334 = arith.negf %333 : vector<2x128xf32>
    %335 = math.exp %334 : vector<2x128xf32>
    %cst_89 = arith.constant 1.000000e+00 : f32
    %336 = vector.broadcast %cst_89 : f32 to vector<2x128xf32>
    %337 = arith.addf %336, %335 : vector<2x128xf32>
    %338 = arith.divf %336, %337 : vector<2x128xf32>
    %339 = math.tanh %333 : vector<2x128xf32>
    %340 = vector.extract_strided_slice %338 {offsets = [0, 0], sizes = [2, 32], strides = [1, 1]} : vector<2x128xf32> to vector<2x32xf32>
    %341 = vector.extract_strided_slice %338 {offsets = [0, 32], sizes = [2, 32], strides = [1, 1]} : vector<2x128xf32> to vector<2x32xf32>
    %342 = vector.extract_strided_slice %339 {offsets = [0, 64], sizes = [2, 32], strides = [1, 1]} : vector<2x128xf32> to vector<2x32xf32>
    %343 = vector.extract_strided_slice %338 {offsets = [0, 96], sizes = [2, 32], strides = [1, 1]} : vector<2x128xf32> to vector<2x32xf32>
    %344 = arith.mulf %341, %330 : vector<2x32xf32>
    %345 = arith.mulf %340, %342 : vector<2x32xf32>
    %346 = arith.addf %344, %345 : vector<2x32xf32>
    %347 = math.tanh %346 : vector<2x32xf32>
    %348 = arith.mulf %343, %347 : vector<2x32xf32>
    %c0_90 = arith.constant 0 : index
    %c0_91 = arith.constant 0 : index
    %349 = vector.load %arg13[%c0_90, %c0_91] : memref<16x32xf32, #tpu.memory_space<vmem>>, vector<2x32xf32>
    tpu.vector_store %arg13[%c0_90, %c0_91], %348 {strides = array<i32>} : memref<16x32xf32, #tpu.memory_space<vmem>>, vector<2x32xf32>,
    %350 = vector.extract_strided_slice %327 {offsets = [2, 0], sizes = [2, 128], strides = [1, 1]} : vector<16x128xf32> to vector<2x128xf32>
    %cst_92 = arith.constant dense<0.000000e+00> : vector<2x128xf32>
    %351 = tpu.matmul %348, %328, %cst_92 {dimension_numbers = #tpu.dot_dimension_numbers<[1], [0], [0], [1], [0, 0, 1, 1], [], []>} : vector<2x32xf32>, vector<32x128xf32>, vector<2x128xf32> -> vector<2x128xf32>
    %352 = arith.addf %350, %351 : vector<2x128xf32>
    %353 = arith.negf %352 : vector<2x128xf32>
    %354 = math.exp %353 : vector<2x128xf32>
    %cst_93 = arith.constant 1.000000e+00 : f32
    %355 = vector.broadcast %cst_93 : f32 to vector<2x128xf32>
    %356 = arith.addf %355, %354 : vector<2x128xf32>
    %357 = arith.divf %355, %356 : vector<2x128xf32>
    %358 = math.tanh %352 : vector<2x128xf32>
    %359 = vector.extract_strided_slice %357 {offsets = [0, 0], sizes = [2, 32], strides = [1, 1]} : vector<2x128xf32> to vector<2x32xf32>
    %360 = vector.extract_strided_slice %357 {offsets = [0, 32], sizes = [2, 32], strides = [1, 1]} : vector<2x128xf32> to vector<2x32xf32>
    %361 = vector.extract_strided_slice %358 {offsets = [0, 64], sizes = [2, 32], strides = [1, 1]} : vector<2x128xf32> to vector<2x32xf32>
    %362 = vector.extract_strided_slice %357 {offsets = [0, 96], sizes = [2, 32], strides = [1, 1]} : vector<2x128xf32> to vector<2x32xf32>
    %363 = arith.mulf %360, %346 : vector<2x32xf32>
    %364 = arith.mulf %359, %361 : vector<2x32xf32>
    %365 = arith.addf %363, %364 : vector<2x32xf32>
    %366 = math.tanh %365 : vector<2x32xf32>
    %367 = arith.mulf %362, %366 : vector<2x32xf32>
    %c2_94 = arith.constant 2 : index
    %c0_95 = arith.constant 0 : index
    %368 = vector.load %arg13[%c2_94, %c0_95] : memref<16x32xf32, #tpu.memory_space<vmem>>, vector<2x32xf32>
    tpu.vector_store %arg13[%c2_94, %c0_95], %367 {strides = array<i32>} : memref<16x32xf32, #tpu.memory_space<vmem>>, vector<2x32xf32>,
    %369 = vector.extract_strided_slice %327 {offsets = [4, 0], sizes = [2, 128], strides = [1, 1]} : vector<16x128xf32> to vector<2x128xf32>
    %cst_96 = arith.constant dense<0.000000e+00> : vector<2x128xf32>
    %370 = tpu.matmul %367, %328, %cst_96 {dimension_numbers = #tpu.dot_dimension_numbers<[1], [0], [0], [1], [0, 0, 1, 1], [], []>} : vector<2x32xf32>, vector<32x128xf32>, vector<2x128xf32> -> vector<2x128xf32>
    %371 = arith.addf %369, %370 : vector<2x128xf32>
    %372 = arith.negf %371 : vector<2x128xf32>
    %373 = math.exp %372 : vector<2x128xf32>
    %cst_97 = arith.constant 1.000000e+00 : f32
    %374 = vector.broadcast %cst_97 : f32 to vector<2x128xf32>
    %375 = arith.addf %374, %373 : vector<2x128xf32>
    %376 = arith.divf %374, %375 : vector<2x128xf32>
    %377 = math.tanh %371 : vector<2x128xf32>
    %378 = vector.extract_strided_slice %376 {offsets = [0, 0], sizes = [2, 32], strides = [1, 1]} : vector<2x128xf32> to vector<2x32xf32>
    %379 = vector.extract_strided_slice %376 {offsets = [0, 32], sizes = [2, 32], strides = [1, 1]} : vector<2x128xf32> to vector<2x32xf32>
    %380 = vector.extract_strided_slice %377 {offsets = [0, 64], sizes = [2, 32], strides = [1, 1]} : vector<2x128xf32> to vector<2x32xf32>
    %381 = vector.extract_strided_slice %376 {offsets = [0, 96], sizes = [2, 32], strides = [1, 1]} : vector<2x128xf32> to vector<2x32xf32>
    %382 = arith.mulf %379, %365 : vector<2x32xf32>
    %383 = arith.mulf %378, %380 : vector<2x32xf32>
    %384 = arith.addf %382, %383 : vector<2x32xf32>
    %385 = math.tanh %384 : vector<2x32xf32>
    %386 = arith.mulf %381, %385 : vector<2x32xf32>
    %c4_98 = arith.constant 4 : index
    %c0_99 = arith.constant 0 : index
    %387 = vector.load %arg13[%c4_98, %c0_99] : memref<16x32xf32, #tpu.memory_space<vmem>>, vector<2x32xf32>
    tpu.vector_store %arg13[%c4_98, %c0_99], %386 {strides = array<i32>} : memref<16x32xf32, #tpu.memory_space<vmem>>, vector<2x32xf32>,
    %388 = vector.extract_strided_slice %327 {offsets = [6, 0], sizes = [2, 128], strides = [1, 1]} : vector<16x128xf32> to vector<2x128xf32>
    %cst_100 = arith.constant dense<0.000000e+00> : vector<2x128xf32>
    %389 = tpu.matmul %386, %328, %cst_100 {dimension_numbers = #tpu.dot_dimension_numbers<[1], [0], [0], [1], [0, 0, 1, 1], [], []>} : vector<2x32xf32>, vector<32x128xf32>, vector<2x128xf32> -> vector<2x128xf32>
    %390 = arith.addf %388, %389 : vector<2x128xf32>
    %391 = arith.negf %390 : vector<2x128xf32>
    %392 = math.exp %391 : vector<2x128xf32>
    %cst_101 = arith.constant 1.000000e+00 : f32
    %393 = vector.broadcast %cst_101 : f32 to vector<2x128xf32>
    %394 = arith.addf %393, %392 : vector<2x128xf32>
    %395 = arith.divf %393, %394 : vector<2x128xf32>
    %396 = math.tanh %390 : vector<2x128xf32>
    %397 = vector.extract_strided_slice %395 {offsets = [0, 0], sizes = [2, 32], strides = [1, 1]} : vector<2x128xf32> to vector<2x32xf32>
    %398 = vector.extract_strided_slice %395 {offsets = [0, 32], sizes = [2, 32], strides = [1, 1]} : vector<2x128xf32> to vector<2x32xf32>
    %399 = vector.extract_strided_slice %396 {offsets = [0, 64], sizes = [2, 32], strides = [1, 1]} : vector<2x128xf32> to vector<2x32xf32>
    %400 = vector.extract_strided_slice %395 {offsets = [0, 96], sizes = [2, 32], strides = [1, 1]} : vector<2x128xf32> to vector<2x32xf32>
    %401 = arith.mulf %398, %384 : vector<2x32xf32>
    %402 = arith.mulf %397, %399 : vector<2x32xf32>
    %403 = arith.addf %401, %402 : vector<2x32xf32>
    %404 = math.tanh %403 : vector<2x32xf32>
    %405 = arith.mulf %400, %404 : vector<2x32xf32>
    %c6_102 = arith.constant 6 : index
    %c0_103 = arith.constant 0 : index
    %406 = vector.load %arg13[%c6_102, %c0_103] : memref<16x32xf32, #tpu.memory_space<vmem>>, vector<2x32xf32>
    tpu.vector_store %arg13[%c6_102, %c0_103], %405 {strides = array<i32>} : memref<16x32xf32, #tpu.memory_space<vmem>>, vector<2x32xf32>,
    %407 = vector.extract_strided_slice %327 {offsets = [8, 0], sizes = [2, 128], strides = [1, 1]} : vector<16x128xf32> to vector<2x128xf32>
    %cst_104 = arith.constant dense<0.000000e+00> : vector<2x128xf32>
    %408 = tpu.matmul %405, %328, %cst_104 {dimension_numbers = #tpu.dot_dimension_numbers<[1], [0], [0], [1], [0, 0, 1, 1], [], []>} : vector<2x32xf32>, vector<32x128xf32>, vector<2x128xf32> -> vector<2x128xf32>
    %409 = arith.addf %407, %408 : vector<2x128xf32>
    %410 = arith.negf %409 : vector<2x128xf32>
    %411 = math.exp %410 : vector<2x128xf32>
    %cst_105 = arith.constant 1.000000e+00 : f32
    %412 = vector.broadcast %cst_105 : f32 to vector<2x128xf32>
    %413 = arith.addf %412, %411 : vector<2x128xf32>
    %414 = arith.divf %412, %413 : vector<2x128xf32>
    %415 = math.tanh %409 : vector<2x128xf32>
    %416 = vector.extract_strided_slice %414 {offsets = [0, 0], sizes = [2, 32], strides = [1, 1]} : vector<2x128xf32> to vector<2x32xf32>
    %417 = vector.extract_strided_slice %414 {offsets = [0, 32], sizes = [2, 32], strides = [1, 1]} : vector<2x128xf32> to vector<2x32xf32>
    %418 = vector.extract_strided_slice %415 {offsets = [0, 64], sizes = [2, 32], strides = [1, 1]} : vector<2x128xf32> to vector<2x32xf32>
    %419 = vector.extract_strided_slice %414 {offsets = [0, 96], sizes = [2, 32], strides = [1, 1]} : vector<2x128xf32> to vector<2x32xf32>
    %420 = arith.mulf %417, %403 : vector<2x32xf32>
    %421 = arith.mulf %416, %418 : vector<2x32xf32>
    %422 = arith.addf %420, %421 : vector<2x32xf32>
    %423 = math.tanh %422 : vector<2x32xf32>
    %424 = arith.mulf %419, %423 : vector<2x32xf32>
    %c8_106 = arith.constant 8 : index
    %c0_107 = arith.constant 0 : index
    %425 = vector.load %arg13[%c8_106, %c0_107] : memref<16x32xf32, #tpu.memory_space<vmem>>, vector<2x32xf32>
    tpu.vector_store %arg13[%c8_106, %c0_107], %424 {strides = array<i32>} : memref<16x32xf32, #tpu.memory_space<vmem>>, vector<2x32xf32>,
    %426 = vector.extract_strided_slice %327 {offsets = [10, 0], sizes = [2, 128], strides = [1, 1]} : vector<16x128xf32> to vector<2x128xf32>
    %cst_108 = arith.constant dense<0.000000e+00> : vector<2x128xf32>
    %427 = tpu.matmul %424, %328, %cst_108 {dimension_numbers = #tpu.dot_dimension_numbers<[1], [0], [0], [1], [0, 0, 1, 1], [], []>} : vector<2x32xf32>, vector<32x128xf32>, vector<2x128xf32> -> vector<2x128xf32>
    %428 = arith.addf %426, %427 : vector<2x128xf32>
    %429 = arith.negf %428 : vector<2x128xf32>
    %430 = math.exp %429 : vector<2x128xf32>
    %cst_109 = arith.constant 1.000000e+00 : f32
    %431 = vector.broadcast %cst_109 : f32 to vector<2x128xf32>
    %432 = arith.addf %431, %430 : vector<2x128xf32>
    %433 = arith.divf %431, %432 : vector<2x128xf32>
    %434 = math.tanh %428 : vector<2x128xf32>
    %435 = vector.extract_strided_slice %433 {offsets = [0, 0], sizes = [2, 32], strides = [1, 1]} : vector<2x128xf32> to vector<2x32xf32>
    %436 = vector.extract_strided_slice %433 {offsets = [0, 32], sizes = [2, 32], strides = [1, 1]} : vector<2x128xf32> to vector<2x32xf32>
    %437 = vector.extract_strided_slice %434 {offsets = [0, 64], sizes = [2, 32], strides = [1, 1]} : vector<2x128xf32> to vector<2x32xf32>
    %438 = vector.extract_strided_slice %433 {offsets = [0, 96], sizes = [2, 32], strides = [1, 1]} : vector<2x128xf32> to vector<2x32xf32>
    %439 = arith.mulf %436, %422 : vector<2x32xf32>
    %440 = arith.mulf %435, %437 : vector<2x32xf32>
    %441 = arith.addf %439, %440 : vector<2x32xf32>
    %442 = math.tanh %441 : vector<2x32xf32>
    %443 = arith.mulf %438, %442 : vector<2x32xf32>
    %c10_110 = arith.constant 10 : index
    %c0_111 = arith.constant 0 : index
    %444 = vector.load %arg13[%c10_110, %c0_111] : memref<16x32xf32, #tpu.memory_space<vmem>>, vector<2x32xf32>
    tpu.vector_store %arg13[%c10_110, %c0_111], %443 {strides = array<i32>} : memref<16x32xf32, #tpu.memory_space<vmem>>, vector<2x32xf32>,
    %445 = vector.extract_strided_slice %327 {offsets = [12, 0], sizes = [2, 128], strides = [1, 1]} : vector<16x128xf32> to vector<2x128xf32>
    %cst_112 = arith.constant dense<0.000000e+00> : vector<2x128xf32>
    %446 = tpu.matmul %443, %328, %cst_112 {dimension_numbers = #tpu.dot_dimension_numbers<[1], [0], [0], [1], [0, 0, 1, 1], [], []>} : vector<2x32xf32>, vector<32x128xf32>, vector<2x128xf32> -> vector<2x128xf32>
    %447 = arith.addf %445, %446 : vector<2x128xf32>
    %448 = arith.negf %447 : vector<2x128xf32>
    %449 = math.exp %448 : vector<2x128xf32>
    %cst_113 = arith.constant 1.000000e+00 : f32
    %450 = vector.broadcast %cst_113 : f32 to vector<2x128xf32>
    %451 = arith.addf %450, %449 : vector<2x128xf32>
    %452 = arith.divf %450, %451 : vector<2x128xf32>
    %453 = math.tanh %447 : vector<2x128xf32>
    %454 = vector.extract_strided_slice %452 {offsets = [0, 0], sizes = [2, 32], strides = [1, 1]} : vector<2x128xf32> to vector<2x32xf32>
    %455 = vector.extract_strided_slice %452 {offsets = [0, 32], sizes = [2, 32], strides = [1, 1]} : vector<2x128xf32> to vector<2x32xf32>
    %456 = vector.extract_strided_slice %453 {offsets = [0, 64], sizes = [2, 32], strides = [1, 1]} : vector<2x128xf32> to vector<2x32xf32>
    %457 = vector.extract_strided_slice %452 {offsets = [0, 96], sizes = [2, 32], strides = [1, 1]} : vector<2x128xf32> to vector<2x32xf32>
    %458 = arith.mulf %455, %441 : vector<2x32xf32>
    %459 = arith.mulf %454, %456 : vector<2x32xf32>
    %460 = arith.addf %458, %459 : vector<2x32xf32>
    %461 = math.tanh %460 : vector<2x32xf32>
    %462 = arith.mulf %457, %461 : vector<2x32xf32>
    %c12_114 = arith.constant 12 : index
    %c0_115 = arith.constant 0 : index
    %463 = vector.load %arg13[%c12_114, %c0_115] : memref<16x32xf32, #tpu.memory_space<vmem>>, vector<2x32xf32>
    tpu.vector_store %arg13[%c12_114, %c0_115], %462 {strides = array<i32>} : memref<16x32xf32, #tpu.memory_space<vmem>>, vector<2x32xf32>,
    %464 = vector.extract_strided_slice %327 {offsets = [14, 0], sizes = [2, 128], strides = [1, 1]} : vector<16x128xf32> to vector<2x128xf32>
    %cst_116 = arith.constant dense<0.000000e+00> : vector<2x128xf32>
    %465 = tpu.matmul %462, %328, %cst_116 {dimension_numbers = #tpu.dot_dimension_numbers<[1], [0], [0], [1], [0, 0, 1, 1], [], []>} : vector<2x32xf32>, vector<32x128xf32>, vector<2x128xf32> -> vector<2x128xf32>
    %466 = arith.addf %464, %465 : vector<2x128xf32>
    %467 = arith.negf %466 : vector<2x128xf32>
    %468 = math.exp %467 : vector<2x128xf32>
    %cst_117 = arith.constant 1.000000e+00 : f32
    %469 = vector.broadcast %cst_117 : f32 to vector<2x128xf32>
    %470 = arith.addf %469, %468 : vector<2x128xf32>
    %471 = arith.divf %469, %470 : vector<2x128xf32>
    %472 = math.tanh %466 : vector<2x128xf32>
    %473 = vector.extract_strided_slice %471 {offsets = [0, 0], sizes = [2, 32], strides = [1, 1]} : vector<2x128xf32> to vector<2x32xf32>
    %474 = vector.extract_strided_slice %471 {offsets = [0, 32], sizes = [2, 32], strides = [1, 1]} : vector<2x128xf32> to vector<2x32xf32>
    %475 = vector.extract_strided_slice %472 {offsets = [0, 64], sizes = [2, 32], strides = [1, 1]} : vector<2x128xf32> to vector<2x32xf32>
    %476 = vector.extract_strided_slice %471 {offsets = [0, 96], sizes = [2, 32], strides = [1, 1]} : vector<2x128xf32> to vector<2x32xf32>
    %477 = arith.mulf %474, %460 : vector<2x32xf32>
    %478 = arith.mulf %473, %475 : vector<2x32xf32>
    %479 = arith.addf %477, %478 : vector<2x32xf32>
    %480 = math.tanh %479 : vector<2x32xf32>
    %481 = arith.mulf %476, %480 : vector<2x32xf32>
    %c14_118 = arith.constant 14 : index
    %c0_119 = arith.constant 0 : index
    %482 = vector.load %arg13[%c14_118, %c0_119] : memref<16x32xf32, #tpu.memory_space<vmem>>, vector<2x32xf32>
    tpu.vector_store %arg13[%c14_118, %c0_119], %481 {strides = array<i32>} : memref<16x32xf32, #tpu.memory_space<vmem>>, vector<2x32xf32>,
    %c0_120 = arith.constant 0 : index
    %c0_121 = arith.constant 0 : index
    %483 = vector.load %arg13[%c0_120, %c0_121] : memref<16x32xf32, #tpu.memory_space<vmem>>, vector<16x32xf32>
    %c0_122 = arith.constant 0 : index
    %c0_123 = arith.constant 0 : index
    %484 = vector.load %arg10[%c0_122, %c0_123] : memref<32x4xf32, #tpu.memory_space<vmem>>, vector<32x4xf32>
    %cst_124 = arith.constant dense<0.000000e+00> : vector<16x4xf32>
    %485 = tpu.matmul %483, %484, %cst_124 {dimension_numbers = #tpu.dot_dimension_numbers<[1], [0], [0], [1], [0, 0, 1, 1], [], []>} : vector<16x32xf32>, vector<32x4xf32>, vector<16x4xf32> -> vector<16x4xf32>
    %c0_125 = arith.constant 0 : index
    %c0_126 = arith.constant 0 : index
    %486 = vector.load %arg11[%c0_125, %c0_126] : memref<1x4xf32, #tpu.memory_space<vmem>>, vector<1x4xf32>
    %487 = vector.broadcast %486 : vector<1x4xf32> to vector<16x4xf32>
    %488 = arith.addf %485, %487 : vector<16x4xf32>
    %489 = math.tanh %488 : vector<16x4xf32>
    %c0_127 = arith.constant 0 : index
    %c0_128 = arith.constant 0 : index
    %490 = vector.load %arg12[%c0_127, %c0_128] : memref<16x4xf32, #tpu.memory_space<vmem>>, vector<16x4xf32>
    tpu.vector_store %arg12[%c0_127, %c0_128], %489 {strides = array<i32>} : memref<16x4xf32, #tpu.memory_space<vmem>>, vector<16x4xf32>,
    return
  }
}

</mosaic_0001>

<bundles_post_ra>
// kernel: covid_lstm_forward.1
= control target key start
LH: loop header
LB: loop body
LE: loop exit
PB: predicated region body
PF: predicated region fallthrough
CT: control target
= control target key end

     0   :  { %17 = vsyncpa [#allocation4], 0  ;;  %s4564_s0 = inlined_call_operand.vmem [shape: f32[16,4], index: 0, kind: input, shape index: {}]   ;;  %s4565_s1 = inlined_call_operand.vmem [shape: f32[4,128], index: 1, kind: input, shape index: {}]   ;;  %s4566_s2 = inlined_call_operand.vmem [shape: f32[32,128], index: 2, kind: input, shape index: {}]   ;;  %s4567_s3 = inlined_call_operand.vmem [shape: f32[1,128], index: 3, kind: input, shape index: {}]   ;;  %s4568_s4 = inlined_call_operand.vmem [shape: f32[32,128], index: 4, kind: input, shape index: {}]   ;;  %s4569_s5 = inlined_call_operand.hbm [shape: f32[32,128], index: 5, kind: input, shape index: {}]   ;;  %s4570_s6 = inlined_call_operand.vmem [shape: f32[1,128], index: 6, kind: input, shape index: {}]   ;;  %s4571_s7 = inlined_call_operand.hbm [shape: f32[32,128], index: 7, kind: input, shape index: {}]   ;;  %s4572_s8 = inlined_call_operand.hbm [shape: f32[32,128], index: 8, kind: input, shape index: {}]   ;;  %s4573_s9 = inlined_call_operand.vmem [shape: f32[1,128], index: 9, kind: input, shape index: {}]   ;;  %s4574_s10 = inlined_call_operand.vmem [shape: f32[32,4], index: 10, kind: input, shape index: {}]   ;;  %s4575_s11 = inlined_call_operand.hbm [shape: f32[1,4], index: 11, kind: input, shape index: {}]   ;;  %s4576_s12 = inlined_call_operand.vmem [shape: f32[16,4], index: 12, kind: output, shape index: {}]  }
   0x1   :  { %18 = vsyncpa [#allocation6], 0 }
   0x2   :  { %19 = vsyncpa [#allocation9], 0  ;;  %s3900_s21 = smov [#allocation5]   ;;  %s3901_s23 = smov [#allocation3]  }
   0x3   :  { %s49_s22 = sshll.u32 %s3900_s21, 4  ;;  %s35_s24 = sshll.u32 %s3901_s23, 4  ;;  %s50_s22 = int_to_ptr.vmem [resolvable:$true] %s49_s22  ;;  %s36_s24 = int_to_ptr.vmem [resolvable:$true] %s35_s24 }
   0x4   :  { %s3822_s25 = scalar_lea.vmem %s50_s22, 512  ;;  %p3827_p1 = scmp.lt.s32.totalorder %s50_s22, %s50_s22 }
   0x5   :  { %p3823_p0 = scmp.ne.s32.totalorder %s50_s22, %s3822_s25  ;;  %p3828_p2 = scmp.lt.s32.totalorder %s3822_s25, %s3822_s25 }
   0x7   :  { %p3829_p3 = por %p3828_p2, %p3827_p1 }
   0x9   :  { %p3830_p4 = pnand %p3829_p3, %p3823_p0 }
   0xb   :  { %3833 = shalt.err (!%p3830_p4)
}
   0xc   :  { %s3902_s26 = smov 128   ;;  %s3903_s27 = smov 8  }
   0xd   :  { %55 = dma.hbm_to_vmem [thread:$0]  %s4571_s7, 512, %s50_s22, [#allocation6], %s3902_s26, %s3902_s26, %s3903_s27  }
   0xe   :  { %s3842_s30 = scalar_lea.vmem %s36_s24, 512  ;;  %p3847_p6 = scmp.lt.s32.totalorder %s36_s24, %s36_s24 }
   0xf   :  { %p3843_p5 = scmp.ne.s32.totalorder %s36_s24, %s3842_s30  ;;  %p3848_p7 = scmp.lt.s32.totalorder %s3842_s30, %s3842_s30 }
  0x11   :  { %p3849_p8 = por %p3848_p7, %p3847_p6 }
  0x13   :  { %p3850_p9 = pnand %p3849_p8, %p3843_p5 }
  0x15   :  { %3853 = shalt.err (!%p3850_p9)
}
  0x16   :  { %41 = dma.hbm_to_vmem [thread:$0]  %s4569_s5, 512, %s36_s24, [#allocation4], %s3902_s26, %s3902_s26, %s3903_s27  }
  0x17   :  { %s3904_s15 = smov [#allocation7]   ;;  %s3905_s17 = smov [#allocation8]  }
  0x18   :  { %s61_s16 = sshll.u32 %s3904_s15, 4  ;;  %s78_s18 = sshll.u32 %s3905_s17, 4  ;;  %s62_s16 = int_to_ptr.vmem [resolvable:$true] %s61_s16  ;;  %s79_s18 = int_to_ptr.vmem [resolvable:$true] %s78_s18 }
  0x19   :  { %s3862_s19 = scalar_lea.vmem %s62_s16, 512  ;;  %p3867_p11 = scmp.lt.s32.totalorder %s62_s16, %s62_s16 }
  0x1a   :  { %p3863_p10 = scmp.ne.s32.totalorder %s62_s16, %s3862_s19  ;;  %p3868_p12 = scmp.lt.s32.totalorder %s3862_s19, %s3862_s19 }
  0x1c   :  { %p3869_p13 = por %p3868_p12, %p3867_p11 }
  0x1e   :  { %p3870_p0 = pnand %p3869_p13, %p3863_p10 }
  0x20   :  { %3873 = shalt.err (!%p3870_p0)
}
  0x21   :  { %67 = dma.hbm_to_vmem [thread:$0]  %s4572_s8, 512, %s62_s16, [#allocation6], %s3902_s26, %s3902_s26, %s3903_s27  }
  0x22   :  { %s3882_s21 = scalar_lea.vmem %s79_s18, 16  ;;  %s3886_s5 = scalar_lea.vmem %s79_s18, 32 }
  0x23   :  { %p3883_p1 = scmp.ne.s32.totalorder %s79_s18, %s3882_s21  ;;  %p3887_p2 = scmp.lt.s32.totalorder %s79_s18, %s79_s18 }
  0x24   :  { %p3888_p3 = scmp.lt.s32.totalorder %s3886_s5, %s3882_s21 }
  0x26   :  { %p3889_p4 = por %p3888_p3, %p3887_p2 }
  0x28   :  { %p3890_p5 = pnand %p3889_p4, %p3883_p1 }
  0x2a   :  { %3893 = shalt.err (!%p3890_p5)
}
  0x2b   :  { %81 = dma.hbm_to_vmem [thread:$0]  %s4575_s11, 16, %s79_s18, [#allocation9]  }
  0x2c   :  { %3894 = dma.done.wait [#allocation4], 512  }
  0x2d   :  { %3895 = vsyncadd [#allocation4], 4294966784 }
  0x2e   :  { %3896 = dma.done.wait [#allocation6], 1024  }
  0x2f   :  { %3897 = vsyncadd [#allocation6], 4294966272 }
  0x30   :  { %3898 = dma.done.wait [#allocation9], 16  }
  0x31   :  { %3899 = vsyncadd [#allocation9], 4294967280  ;;  %v3906_v0 = vmov 0.0   ;;  %vm3907_vm0 = vmmov 0   ;;  %vm111_vm1 = vcmask 1043456   ;;  %vm104_vm2 = vcmask 31744  }
  0x32   :  { %3311 = vmatprep.subr.mxu1 %v3906_v0  ;;  %3319 = vmatprep.mubr.msk.f32.mxu1 %vm3907_vm0, %v3906_v0  ;;  %v96_v1 = vld [vmem:[%s4565_s1] sm:$0xf]  ;;  %v3996_v2 = vld [vmem:[%s4566_s2 + $0x18] sm:$0xff]  ;;  %v95_v4 = vld [vmem:[%s4564_s0 + $0x8] sm:$0xff]  ;;  %s3908_s17 = smov 64   ;;  %vm297_vm3 = vcmask 254976  }
  0x33   :  { %v94_v3 = vld [vmem:[%s4564_s0] sm:$0xff]  ;;  %3306 = vmatprep.subr.msk.mxu0 %vm111_vm1, %v96_v1  ;;  %3312 = vmatpush3.msra.mxu1 %v3996_v2  ;;  %v4008_v5 = vld [vmem:[%s4566_s2 + $0x10] sm:$0xff]  ;;  %v4016_v6 = vld [vmem:[%s4566_s2 + $0x8] sm:$0xff]  ;;  %vm194_vm4 = vcmask 261120   ;;  %vm406_vm5 = vcmask 257026   ;;  %vm630_vm6 = vcmask 261126  }
  0x34   :  { %3307 = vmatpush3.msk.msra.mxu0 %vm111_vm1, %v96_v1  ;;  %3308 = vmatprep.mubr.msk.f32.mxu0 %vm104_vm2, %v94_v3  ;;  %v4024_v7 = vld [vmem:[%s4566_s2] sm:$0xff]  ;;  %vm518_vm7 = vcmask 259076  }
  0x35   :  { %3313 = vmatprep.subr.mxu1 %v3906_v0  ;;  %3309 = vmatmul.mubr.msk.f32.vlgmr.msra.gmra.mxu0 %vm104_vm2, %v95_v4  ;;  %v3107_v8 = vld [vmem:[%s4567_s3] ss:$0 sm:$0xff]  ;;  %s3909_s3 = smov 32  }
  0x36   :  { %3314 = vmatpush3.msra.mxu1 %v4008_v5  ;;  %3322 = vmatprep.subr.mxu0 %v3906_v0 }
  0x37   :  { %3315 = vmatprep.subr.mxu1 %v3906_v0  ;;  %3323 = vmatpush3.msra.mxu0 %v3996_v2 }
  0x38   :  { %3316 = vmatpush3.msra.mxu1 %v4016_v6  ;;  %3324 = vmatprep.subr.mxu0 %v3906_v0 }
  0x39   :  { %3317 = vmatprep.subr.mxu1 %v3906_v0  ;;  %3325 = vmatpush3.msra.mxu0 %v4008_v5 }
  0x3a   :  { %3318 = vmatpush3.msra.mxu1 %v4024_v7  ;;  %3326 = vmatprep.subr.mxu0 %v3906_v0 }
  0x3b   :  { %3320 = vmatmul.mubr.f32.vlgmr.msra.gmra.mxu1 %v3906_v0  ;;  %3327 = vmatpush3.msra.mxu0 %v4016_v6 }
  0x3c   :  { %3328 = vmatprep.subr.mxu0 %v3906_v0  ;;  %3330 = vmatprep.mubr.msk.f32.mxu0 %vm3907_vm0, %v3906_v0 }
  0x3d   :  { %3329 = vmatpush3.msra.mxu0 %v4024_v7  ;;  %3333 = vmatprep.subr.mxu1 %v3906_v0 }
  0x3e   :  { %3334 = vmatpush3.msra.mxu1 %v3996_v2  ;;  %3341 = vmatprep.mubr.msk.f32.mxu1 %vm3907_vm0, %v3906_v0 }
  0x3f   :  { %3335 = vmatprep.subr.mxu1 %v3906_v0  ;;  %3344 = vmatprep.subr.mxu0 %v3906_v0 }
  0x40   :  { %3336 = vmatpush3.msra.mxu1 %v4008_v5 }
  0x41   :  { %3337 = vmatprep.subr.mxu1 %v3906_v0 }
  0x42   :  { %3338 = vmatpush3.msra.mxu1 %v4016_v6 }
  0x43   :  { %3339 = vmatprep.subr.mxu1 %v3906_v0 }
  0x44   :  { %3340 = vmatpush3.msra.mxu1 %v4024_v7 }
  0x45   :  { %3355 = vmatprep.subr.mxu1 %v3906_v0 }
  0xf5   :  { %v3310_v9 = vpop.f32.mrf.mxu0 }
  0xf6   :  { %v4054_v10 = vadd.f32 %v3310_v9, %v3107_v8 }
  0xf7   :  { %v181_v11 = vpop.f32.mrf.mxu0 }
  0xf8   :  { %v4056_v12 = vadd.f32 %v3107_v8, %v181_v11 }
  0xfb   :  { %v264_v13 = vpop.f32.mrf.mxu1 }
  0xfc   :  { %v268_v14 = vadd.f32 %v264_v13, %v4056_v12 }
  0xfd   :  { %v3321_v15 = vpop.f32.mrf.mxu1 }
  0xfe   :  { %3618 = vtanh.f32 %v268_v14  ;;  %v3111_v17 = vmul.f32 -1.442695, %v268_v14 }
 0x100   :  { %3620 = vpow2.f32 %v3111_v17 }
 0x10b   :  { %v3619_v16 = vpop.eup %3618 }
 0x10c   :  { %278 = vrot.lane.b32.xlu0 %v3619_v16, %s3908_s17 }
 0x10d   :  { %v3621_v18 = vpop.eup %3620 }
 0x10e   :  { %v272_v19 = vadd.f32 1.0, %v3621_v18 }
 0x110   :  { %3622 = vrcp.f32 %v272_v19 }
 0x11d   :  { %v3623_v20 = vpop.eup %3622 }
 0x11e   :  { %v276_v23 = vmul.f32 0.0, %v3623_v20 }
 0x17e   :  { %v279_v21 = vpop.permute.xlu0 %278 }
 0x17f   :  { %v281_v22 = vmul.f32 %v3623_v20, %v279_v21 }
 0x181   :  { %283 = vrot.lane.b32.xlu0 %v281_v22, %s3909_s3 }
 0x1f3   :  { %v284_v24 = vpop.permute.xlu0 %283 }
 0x1f4   :  { %v286_v25 = vadd.f32 %v284_v24, %v276_v23 }
 0x1f6   :  { %3624 = vtanh.f32 %v286_v25  ;;  %v383_v41 = vrot.slane %v286_v25, 6 }
 0x203   :  { %v3625_v26 = vpop.eup %3624 }
 0x204   :  { %289 = vrot.lane.b32.xlu1 %v3625_v26, %s3908_s17 }
 0x276   :  { %v290_v27 = vpop.permute.xlu1 %289 }
 0x277   :  { %v292_v28 = vmul.f32 %v3623_v20, %v290_v27 }
 0x279   :  { %294 = vrot.lane.b32.xlu1 %v292_v28, %s3909_s3 }
 0x2eb   :  { %v295_v29 = vpop.permute.xlu1 %294 }
 0x2ec   :  { %298 = vst.msk [vmem:[#allocation2] sm:$0x3] %vm297_vm3, %v295_v29  ;;  %3331 = vmatmul.mubr.msk.f32.vlgmr.msra.gmra.mxu0 %vm194_vm4, %v295_v29 }
 0x2ed   :  { %3345 = vmatpush3.msra.mxu0 %v3996_v2  ;;  %3352 = vmatprep.mubr.msk.f32.mxu0 %vm3907_vm0, %v3906_v0 }
 0x2ee   :  { %3346 = vmatprep.subr.mxu0 %v3906_v0 }
 0x2ef   :  { %3347 = vmatpush3.msra.mxu0 %v4008_v5 }
 0x2f0   :  { %3348 = vmatprep.subr.mxu0 %v3906_v0 }
 0x2f1   :  { %3349 = vmatpush3.msra.mxu0 %v4016_v6 }
 0x2f2   :  { %3350 = vmatprep.subr.mxu0 %v3906_v0 }
 0x2f3   :  { %3351 = vmatpush3.msra.mxu0 %v4024_v7 }
 0x2f4   :  { %3366 = vmatprep.subr.mxu0 %v3906_v0 }
 0x3ac   :  { %v367_v30 = vpop.f32.mrf.mxu0 }
 0x3ad   :  { %v372_v31 = vrot.slane %v367_v30, 6 }
 0x3ae   :  { %v3332_v32 = vpop.f32.mrf.mxu0 }
 0x3af   :  { %v374_v33 = vadd.f32 %v372_v31, %v4056_v12 }
 0x3b1   :  { %3626 = vtanh.f32 %v374_v33  ;;  %v3113_v35 = vmul.f32 -1.442695, %v374_v33 }
 0x3b3   :  { %3628 = vpow2.f32 %v3113_v35 }
 0x3be   :  { %v3627_v34 = vpop.eup %3626 }
 0x3bf   :  { %387 = vrot.lane.b32.xlu0 %v3627_v34, %s3908_s17 }
 0x3c0   :  { %v3629_v36 = vpop.eup %3628 }
 0x3c1   :  { %v378_v37 = vadd.f32 1.0, %v3629_v36 }
 0x3c3   :  { %3630 = vrcp.f32 %v378_v37 }
 0x3d0   :  { %v3631_v38 = vpop.eup %3630 }
 0x3d1   :  { %v385_v42 = vmul.f32 %v3631_v38, %v383_v41 }
 0x431   :  { %v388_v39 = vpop.permute.xlu0 %387 }
 0x432   :  { %v390_v40 = vmul.f32 %v3631_v38, %v388_v39 }
 0x434   :  { %392 = vrot.lane.b32.xlu1 %v390_v40, %s3909_s3 }
 0x4a6   :  { %v393_v43 = vpop.permute.xlu1 %392 }
 0x4a7   :  { %v395_v44 = vadd.f32 %v393_v43, %v385_v42 }
 0x4a9   :  { %3632 = vtanh.f32 %v395_v44  ;;  %v495_v61 = vrot.slane %v395_v44, 6 }
 0x4b6   :  { %v3633_v45 = vpop.eup %3632 }
 0x4b7   :  { %398 = vrot.lane.b32.xlu0 %v3633_v45, %s3908_s17 }
 0x529   :  { %v399_v46 = vpop.permute.xlu0 %398 }
 0x52a   :  { %v4079_v47 = vmul.f32 %v3631_v38, %v399_v46 }
 0x52c   :  { %v408_v48 = vrot.slane %v4079_v47, 2 }
 0x52e   :  { %409 = vrot.lane.b32.xlu1 %v408_v48, %s3909_s3 }
 0x5a0   :  { %v410_v49 = vpop.permute.xlu1 %409 }
 0x5a1   :  { %3342 = vmatmul.mubr.msk.f32.vlgmr.msra.gmra.mxu1 %vm194_vm4, %v410_v49 }
 0x5a2   :  { %3356 = vmatpush3.msra.mxu1 %v3996_v2  ;;  %3363 = vmatprep.mubr.msk.f32.mxu1 %vm3907_vm0, %v3906_v0 }
 0x5a3   :  { %3357 = vmatprep.subr.mxu1 %v3906_v0 }
 0x5a4   :  { %3358 = vmatpush3.msra.mxu1 %v4008_v5 }
 0x5a5   :  { %3359 = vmatprep.subr.mxu1 %v3906_v0 }
 0x5a6   :  { %3360 = vmatpush3.msra.mxu1 %v4016_v6 }
 0x5a7   :  { %3361 = vmatprep.subr.mxu1 %v3906_v0 }
 0x5a8   :  { %3362 = vmatpush3.msra.mxu1 %v4024_v7 }
 0x5a9   :  { %3377 = vmatprep.subr.mxu1 %v3906_v0 }
 0x661   :  { %v479_v50 = vpop.f32.mrf.mxu1 }
 0x662   :  { %v484_v51 = vrot.slane %v479_v50, 4 }
 0x663   :  { %v3343_v52 = vpop.f32.mrf.mxu1 }
 0x664   :  { %v486_v53 = vadd.f32 %v484_v51, %v4056_v12 }
 0x666   :  { %3634 = vtanh.f32 %v486_v53  ;;  %v3115_v55 = vmul.f32 -1.442695, %v486_v53 }
 0x668   :  { %3636 = vpow2.f32 %v3115_v55 }
 0x673   :  { %v3635_v54 = vpop.eup %3634 }
 0x674   :  { %499 = vrot.lane.b32.xlu0 %v3635_v54, %s3908_s17 }
 0x675   :  { %v3637_v56 = vpop.eup %3636 }
 0x676   :  { %v490_v57 = vadd.f32 1.0, %v3637_v56 }
 0x678   :  { %3638 = vrcp.f32 %v490_v57 }
 0x685   :  { %v3639_v58 = vpop.eup %3638 }
 0x686   :  { %v497_v62 = vmul.f32 %v3639_v58, %v495_v61 }
 0x6e6   :  { %v500_v59 = vpop.permute.xlu0 %499 }
 0x6e7   :  { %v502_v60 = vmul.f32 %v3639_v58, %v500_v59 }
 0x6e9   :  { %504 = vrot.lane.b32.xlu1 %v502_v60, %s3909_s3 }
 0x75b   :  { %v505_v63 = vpop.permute.xlu1 %504 }
 0x75c   :  { %v507_v1 = vadd.f32 %v505_v63, %v497_v62 }
 0x75e   :  { %3640 = vtanh.f32 %v507_v1  ;;  %v607_v24 = vrot.slane %v507_v1, 6 }
 0x76b   :  { %v3641_v3 = vpop.eup %3640 }
 0x76c   :  { %510 = vrot.lane.b32.xlu0 %v3641_v3, %s3908_s17 }
 0x7de   :  { %v511_v4 = vpop.permute.xlu0 %510 }
 0x7df   :  { %v4098_v8 = vmul.f32 %v3639_v58, %v511_v4 }
 0x7e1   :  { %v520_v9 = vrot.slane %v4098_v8, 4 }
 0x7e3   :  { %521 = vrot.lane.b32.xlu1 %v520_v9, %s3909_s3 }
 0x855   :  { %v522_v11 = vpop.permute.xlu1 %521 }
 0x856   :  { %3353 = vmatmul.mubr.msk.f32.vlgmr.msra.gmra.mxu0 %vm194_vm4, %v522_v11 }
 0x857   :  { %3367 = vmatpush3.msra.mxu0 %v3996_v2  ;;  %3374 = vmatprep.mubr.msk.f32.mxu0 %vm3907_vm0, %v3906_v0 }
 0x858   :  { %3368 = vmatprep.subr.mxu0 %v3906_v0 }
 0x859   :  { %3369 = vmatpush3.msra.mxu0 %v4008_v5 }
 0x85a   :  { %3370 = vmatprep.subr.mxu0 %v3906_v0 }
 0x85b   :  { %3371 = vmatpush3.msra.mxu0 %v4016_v6 }
 0x85c   :  { %3372 = vmatprep.subr.mxu0 %v3906_v0 }
 0x85d   :  { %3373 = vmatpush3.msra.mxu0 %v4024_v7 }
 0x85e   :  { %3388 = vmatprep.subr.mxu0 %v3906_v0 }
 0x916   :  { %v591_v13 = vpop.f32.mrf.mxu0 }
 0x917   :  { %v596_v14 = vrot.slane %v591_v13, 2 }
 0x918   :  { %v3354_v15 = vpop.f32.mrf.mxu0 }
 0x919   :  { %v598_v16 = vadd.f32 %v596_v14, %v4056_v12 }
 0x91b   :  { %3642 = vtanh.f32 %v598_v16  ;;  %v3117_v18 = vmul.f32 -1.442695, %v598_v16 }
 0x91d   :  { %3644 = vpow2.f32 %v3117_v18 }
 0x928   :  { %v3643_v17 = vpop.eup %3642 }
 0x929   :  { %611 = vrot.lane.b32.xlu0 %v3643_v17, %s3908_s17 }
 0x92a   :  { %v3645_v19 = vpop.eup %3644 }
 0x92b   :  { %v602_v20 = vadd.f32 1.0, %v3645_v19 }
 0x92d   :  { %3646 = vrcp.f32 %v602_v20 }
 0x93a   :  { %v3647_v21 = vpop.eup %3646 }
 0x93b   :  { %v609_v25 = vmul.f32 %v3647_v21, %v607_v24 }
 0x99b   :  { %v612_v22 = vpop.permute.xlu0 %611 }
 0x99c   :  { %v614_v23 = vmul.f32 %v3647_v21, %v612_v22 }
 0x99e   :  { %616 = vrot.lane.b32.xlu1 %v614_v23, %s3909_s3 }
 0xa10   :  { %v617_v26 = vpop.permute.xlu1 %616 }
 0xa11   :  { %v619_v27 = vadd.f32 %v617_v26, %v609_v25 }
 0xa13   :  { %3648 = vtanh.f32 %v619_v27  ;;  %v716_v42 = vrot.slane %v619_v27, 6 }
 0xa20   :  { %v3649_v12 = vpop.eup %3648 }
 0xa21   :  { %622 = vrot.lane.b32.xlu0 %v3649_v12, %s3908_s17 }
 0xa93   :  { %v623_v28 = vpop.permute.xlu0 %622 }
 0xa94   :  { %v4117_v29 = vmul.f32 %v3647_v21, %v623_v28 }
 0xa96   :  { %v632_v30 = vrot.slane %v4117_v29, 6 }
 0xa98   :  { %633 = vrot.lane.b32.xlu1 %v632_v30, %s3909_s3 }
 0xb0a   :  { %v634_v31 = vpop.permute.xlu1 %633 }
 0xb0b   :  { %3364 = vmatmul.mubr.msk.f32.vlgmr.msra.gmra.mxu1 %vm194_vm4, %v634_v31 }
 0xb0c   :  { %3378 = vmatpush3.msra.mxu1 %v3996_v2  ;;  %3385 = vmatprep.mubr.msk.f32.mxu1 %vm3907_vm0, %v3906_v0 }
 0xb0d   :  { %3379 = vmatprep.subr.mxu1 %v3906_v0 }
 0xb0e   :  { %3380 = vmatpush3.msra.mxu1 %v4008_v5 }
 0xb0f   :  { %3381 = vmatprep.subr.mxu1 %v3906_v0 }
 0xb10   :  { %3382 = vmatpush3.msra.mxu1 %v4016_v6 }
 0xb11   :  { %3383 = vmatprep.subr.mxu1 %v3906_v0 }
 0xb12   :  { %3384 = vmatpush3.msra.mxu1 %v4024_v7 }
 0xbcb   :  { %v703_v32 = vpop.f32.mrf.mxu1 }
 0xbcc   :  { %v707_v33 = vadd.f32 %v703_v32, %v4054_v10 }
 0xbcd   :  { %v3365_v34 = vpop.f32.mrf.mxu1 }
 0xbce   :  { %3650 = vtanh.f32 %v707_v33  ;;  %v3119_v36 = vmul.f32 -1.442695, %v707_v33 }
 0xbd0   :  { %3652 = vpow2.f32 %v3119_v36 }
 0xbdb   :  { %v3651_v35 = vpop.eup %3650 }
 0xbdc   :  { %720 = vrot.lane.b32.xlu0 %v3651_v35, %s3908_s17 }
 0xbdd   :  { %v3653_v37 = vpop.eup %3652 }
 0xbde   :  { %v711_v38 = vadd.f32 1.0, %v3653_v37 }
 0xbe0   :  { %3654 = vrcp.f32 %v711_v38 }
 0xbed   :  { %v3655_v39 = vpop.eup %3654 }
 0xbee   :  { %v718_v43 = vmul.f32 %v3655_v39, %v716_v42 }
 0xc4e   :  { %v721_v40 = vpop.permute.xlu0 %720 }
 0xc4f   :  { %v723_v41 = vmul.f32 %v3655_v39, %v721_v40 }
 0xc51   :  { %725 = vrot.lane.b32.xlu1 %v723_v41, %s3909_s3 }
 0xcc3   :  { %v726_v44 = vpop.permute.xlu1 %725 }
 0xcc4   :  { %v728_v45 = vadd.f32 %v726_v44, %v718_v43 }
 0xcc6   :  { %3656 = vtanh.f32 %v728_v45 }
 0xcd3   :  { %v3657_v46 = vpop.eup %3656 }
 0xcd4   :  { %731 = vrot.lane.b32.xlu0 %v3657_v46, %s3908_s17 }
 0xd46   :  { %v732_v48 = vpop.permute.xlu0 %731 }
 0xd47   :  { %v734_v49 = vmul.f32 %v3655_v39, %v732_v48  ;;  %v1075_v48 = vld [vmem:[%s4568_s4 + $0x18] sm:$0xff] }
 0xd48   :  { %3399 = vmatprep.subr.mxu1 %v1075_v48 }
 0xd49   :  { %736 = vrot.lane.b32.xlu1 %v734_v49, %s3909_s3  ;;  %v1074_v49 = vld [vmem:[%s4568_s4 + $0x10] sm:$0xff] }
 0xdbb   :  { %v737_v50 = vpop.permute.xlu1 %736 }
 0xdbc   :  { %739 = vst.msk [vmem:[#allocation2 + $0x8] sm:$0x3] %vm297_vm3, %v737_v50  ;;  %3375 = vmatmul.mubr.msk.f32.vlgmr.msra.gmra.mxu0 %vm194_vm4, %v737_v50  ;;  %v4187_v50 = vld [vmem:[#allocation3 + $0x18] sm:$0xff] }
 0xdbd   :  { %3389 = vmatpush3.msra.mxu0 %v3996_v2  ;;  %3396 = vmatprep.mubr.msk.f32.mxu0 %vm3907_vm0, %v3906_v0 }
 0xdbe   :  { %3390 = vmatprep.subr.mxu0 %v3906_v0 }
 0xdbf   :  { %3391 = vmatpush3.msra.mxu0 %v4008_v5 }
 0xdc0   :  { %3392 = vmatprep.subr.mxu0 %v3906_v0 }
 0xdc1   :  { %3393 = vmatpush3.msra.mxu0 %v4016_v6 }
 0xdc2   :  { %3394 = vmatprep.subr.mxu0 %v3906_v0 }
 0xdc3   :  { %3395 = vmatpush3.msra.mxu0 %v4024_v7  ;;  %v824_v7 = vrot.slane %v728_v45, 6 }
 0xdc4   :  { %3410 = vmatprep.subr.mxu0 %v3906_v0 }
 0xe7c   :  { %v808_v51 = vpop.f32.mrf.mxu0 }
 0xe7d   :  { %v813_v52 = vrot.slane %v808_v51, 6  ;;  %v4193_v51 = vld [vmem:[#allocation3 + $0x10] sm:$0xff] }
 0xe7e   :  { %v3376_v2 = vpop.f32.mrf.mxu0 }
 0xe7f   :  { %v815_v53 = vadd.f32 %v813_v52, %v4054_v10  ;;  %v4196_v52 = vld [vmem:[#allocation3 + $0x8] sm:$0xff]  ;;  %v1072_v2 = vld [vmem:[%s4568_s4] sm:$0xff] }
 0xe81   :  { %3658 = vtanh.f32 %v815_v53  ;;  %v3121_v5 = vmul.f32 -1.442695, %v815_v53  ;;  %v4205_v53 = vld [vmem:[#allocation3] sm:$0xff] }
 0xe83   :  { %3660 = vpow2.f32 %v3121_v5 }
 0xe8e   :  { %v3659_v54 = vpop.eup %3658 }
 0xe8f   :  { %828 = vrot.lane.b32.xlu0 %v3659_v54, %s3908_s17 }
 0xe90   :  { %v3661_v55 = vpop.eup %3660 }
 0xe91   :  { %v819_v56 = vadd.f32 1.0, %v3661_v55 }
 0xe93   :  { %3662 = vrcp.f32 %v819_v56 }
 0xea0   :  { %v3663_v6 = vpop.eup %3662 }
 0xea1   :  { %v826_v59 = vmul.f32 %v3663_v6, %v824_v7 }
 0xf01   :  { %v829_v57 = vpop.permute.xlu0 %828 }
 0xf02   :  { %v831_v58 = vmul.f32 %v3663_v6, %v829_v57 }
 0xf04   :  { %833 = vrot.lane.b32.xlu1 %v831_v58, %s3909_s3 }
 0xf76   :  { %v834_v60 = vpop.permute.xlu1 %833 }
 0xf77   :  { %v836_v61 = vadd.f32 %v834_v60, %v826_v59  ;;  %v3126_v60 = vld [vmem:[%s4570_s6] ss:$0 sm:$0xff] }
 0xf79   :  { %3664 = vtanh.f32 %v836_v61  ;;  %v935_v22 = vrot.slane %v836_v61, 6 }
 0xf86   :  { %v3665_v62 = vpop.eup %3664 }
 0xf87   :  { %839 = vrot.lane.b32.xlu0 %v3665_v62, %s3908_s17 }
 0xff9   :  { %v840_v63 = vpop.permute.xlu0 %839 }
 0xffa   :  { %v4152_v1 = vmul.f32 %v3663_v6, %v840_v63 }
 0xffc   :  { %v848_v3 = vrot.slane %v4152_v1, 2 }
 0xffe   :  { %849 = vrot.lane.b32.xlu1 %v848_v3, %s3909_s3 }
0x1070   :  { %v850_v4 = vpop.permute.xlu1 %849 }
0x1071   :  { %3386 = vmatmul.mubr.msk.f32.vlgmr.msra.gmra.mxu1 %vm194_vm4, %v850_v4 }
0x1072   :  { %3400 = vmatpush3.msra.mxu1 %v1075_v48 }
0x1073   :  { %3401 = vmatprep.subr.mxu1 %v1074_v49 }
0x1074   :  { %3402 = vmatpush3.msra.mxu1 %v1074_v49 }
0x1131   :  { %v919_v9 = vpop.f32.mrf.mxu1 }
0x1132   :  { %v924_v11 = vrot.slane %v919_v9, 4 }
0x1133   :  { %v3387_v13 = vpop.f32.mrf.mxu1 }
0x1134   :  { %v926_v14 = vadd.f32 %v924_v11, %v4054_v10 }
0x1136   :  { %3666 = vtanh.f32 %v926_v14  ;;  %v3123_v16 = vmul.f32 -1.442695, %v926_v14 }
0x1138   :  { %3668 = vpow2.f32 %v3123_v16 }
0x1143   :  { %v3667_v15 = vpop.eup %3666 }
0x1144   :  { %939 = vrot.lane.b32.xlu0 %v3667_v15, %s3908_s17 }
0x1145   :  { %v3669_v17 = vpop.eup %3668 }
0x1146   :  { %v930_v18 = vadd.f32 1.0, %v3669_v17 }
0x1148   :  { %3670 = vrcp.f32 %v930_v18 }
0x1155   :  { %v3671_v19 = vpop.eup %3670 }
0x1156   :  { %v937_v23 = vmul.f32 %v3671_v19, %v935_v22 }
0x11b6   :  { %v940_v20 = vpop.permute.xlu0 %939 }
0x11b7   :  { %v942_v21 = vmul.f32 %v3671_v19, %v940_v20 }
0x11b9   :  { %944 = vrot.lane.b32.xlu1 %v942_v21, %s3909_s3 }
0x122b   :  { %v945_v24 = vpop.permute.xlu1 %944 }
0x122c   :  { %v947_v25 = vadd.f32 %v945_v24, %v937_v23 }
0x122e   :  { %3672 = vtanh.f32 %v947_v25 }
0x123b   :  { %v3673_v26 = vpop.eup %3672 }
0x123c   :  { %950 = vrot.lane.b32.xlu0 %v3673_v26, %s3908_s17 }
0x12ae   :  { %v951_v27 = vpop.permute.xlu0 %950 }
0x12af   :  { %v953_v12 = vmul.f32 %v3671_v19, %v951_v27 }
0x12b1   :  { %v959_v28 = vrot.slane %v953_v12, 4 }
0x12b3   :  { %960 = vrot.lane.b32.xlu1 %v959_v28, %s3909_s3 }
0x1325   :  { %v961_v30 = vpop.permute.xlu1 %960 }
0x1326   :  { %3397 = vmatmul.mubr.msk.f32.vlgmr.msra.gmra.mxu0 %vm194_vm4, %v961_v30 }
0x1327   :  { %3418 = vmatprep.mubr.msk.f32.mxu0 %vm3907_vm0, %v3906_v0  ;;  %3411 = vmatpush3.msra.mxu0 %v4187_v50 }
0x1328   :  { %3412 = vmatprep.subr.mxu0 %v3906_v0 }
0x1329   :  { %3413 = vmatpush3.msra.mxu0 %v4193_v51 }
0x132a   :  { %3414 = vmatprep.subr.mxu0 %v3906_v0 }
0x132b   :  { %3415 = vmatpush3.msra.mxu0 %v4196_v52 }
0x132c   :  { %3416 = vmatprep.subr.mxu0 %v3906_v0 }
0x132d   :  { %3417 = vmatpush3.msra.mxu0 %v4205_v53 }
0x132e   :  { %3419 = vmatmul.mubr.f32.vlgmr.msra.gmra.mxu0 %v3906_v0  ;;  %3432 = vmatprep.subr.mxu0 %v3906_v0 }
0x132f   :  { %3433 = vmatpush3.msra.mxu0 %v4187_v50  ;;  %3440 = vmatprep.mubr.msk.f32.mxu0 %vm3907_vm0, %v3906_v0 }
0x1330   :  { %3434 = vmatprep.subr.mxu0 %v3906_v0 }
0x1331   :  { %3435 = vmatpush3.msra.mxu0 %v4193_v51 }
0x1332   :  { %3436 = vmatprep.subr.mxu0 %v3906_v0 }
0x1333   :  { %3437 = vmatpush3.msra.mxu0 %v4196_v52 }
0x1334   :  { %3438 = vmatprep.subr.mxu0 %v3906_v0 }
0x1335   :  { %3439 = vmatpush3.msra.mxu0 %v4205_v53 }
0x1336   :  { %3454 = vmatprep.subr.mxu0 %v3906_v0 }
0x13e6   :  { %v1030_v31 = vpop.f32.mrf.mxu0 }
0x13e7   :  { %v1035_v32 = vrot.slane %v1030_v31, 2 }
0x13e8   :  { %v3398_v33 = vpop.f32.mrf.mxu0 }
0x13e9   :  { %v1037_v34 = vadd.f32 %v1035_v32, %v4054_v10  ;;  %v1046_v10 = vrot.slane %v947_v25, 6 }
0x13eb   :  { %3674 = vtanh.f32 %v1037_v34  ;;  %v3125_v36 = vmul.f32 -1.442695, %v1037_v34 }
0x13ed   :  { %3676 = vpow2.f32 %v3125_v36 }
0x13ee   :  { %v1234_v7 = vpop.f32.mrf.mxu0 }
0x13f0   :  { %v3420_v59 = vpop.f32.mrf.mxu0 }
0x13f8   :  { %v3675_v35 = vpop.eup %3674 }
0x13f9   :  { %1050 = vrot.lane.b32.xlu0 %v3675_v35, %s3908_s17 }
0x13fa   :  { %v3677_v37 = vpop.eup %3676 }
0x13fb   :  { %v1041_v38 = vadd.f32 1.0, %v3677_v37 }
0x13fd   :  { %3678 = vrcp.f32 %v1041_v38 }
0x140a   :  { %v3679_v39 = vpop.eup %3678 }
0x140b   :  { %v1048_v42 = vmul.f32 %v3679_v39, %v1046_v10 }
0x146b   :  { %v1051_v40 = vpop.permute.xlu0 %1050 }
0x146c   :  { %v1053_v41 = vmul.f32 %v3679_v39, %v1051_v40 }
0x146e   :  { %1055 = vrot.lane.b32.xlu1 %v1053_v41, %s3909_s3 }
0x1472   :  { %403 = vrot.lane.b32.xlu1 %v4079_v47, %s3909_s3 }
0x1476   :  { %627 = vrot.lane.b32.xlu1 %v4117_v29, %s3909_s3 }
0x147a   :  { %955 = vrot.lane.b32.xlu1 %v953_v12, %s3909_s3 }
0x14e0   :  { %v1056_v43 = vpop.permute.xlu1 %1055 }
0x14e1   :  { %v1058_v44 = vadd.f32 %v1056_v43, %v1048_v42 }
0x14e3   :  { %3680 = vtanh.f32 %v1058_v44 }
0x14e4   :  { %v404_v45 = vpop.permute.xlu1 %403 }
0x14e5   :  { %407 = vst.msk [vmem:[#allocation2] sm:$0xc] %vm406_vm5, %v404_v45 }
0x14e8   :  { %v628_v46 = vpop.permute.xlu1 %627 }
0x14e9   :  { %631 = vst.msk [vmem:[#allocation2] sm:$0xc0] %vm630_vm6, %v628_v46 }
0x14ec   :  { %v956_v47 = vpop.permute.xlu1 %955 }
0x14ed   :  { %958 = vst.msk [vmem:[#allocation2 + $0x8] sm:$0x30] %vm518_vm7, %v956_v47 }
0x14f0   :  { %v3681_v29 = vpop.eup %3680 }
0x14f1   :  { %1061 = vrot.lane.b32.xlu0 %v3681_v29, %s3908_s17 }
0x14f5   :  { %515 = vrot.lane.b32.xlu0 %v4098_v8, %s3909_s3  ;;  %v1073_v8 = vld [vmem:[%s4568_s4 + $0x8] sm:$0xff] }
0x14f6   :  { %3403 = vmatprep.subr.mxu1 %v1073_v8 }
0x14f7   :  { %3404 = vmatpush3.msra.mxu1 %v1073_v8 }
0x14f8   :  { %3405 = vmatprep.subr.mxu1 %v1072_v2 }
0x14f9   :  { %844 = vrot.lane.b32.xlu0 %v4152_v1, %s3909_s3  ;;  %3406 = vmatpush3.msra.mxu1 %v1072_v2 }
0x14fa   :  { %3421 = vmatprep.subr.mxu1 %v3906_v0 }
0x1563   :  { %v1062_v54 = vpop.permute.xlu0 %1061 }
0x1564   :  { %v1064_v5 = vmul.f32 %v3679_v39, %v1062_v54 }
0x1566   :  { %1066 = vrot.lane.b32.xlu0 %v1064_v5, %s3909_s3 }
0x1567   :  { %v516_v55 = vpop.permute.xlu0 %515 }
0x1568   :  { %519 = vst.msk [vmem:[#allocation2] sm:$0x30] %vm518_vm7, %v516_v55 }
0x156b   :  { %v845_v56 = vpop.permute.xlu0 %844 }
0x156c   :  { %847 = vst.msk [vmem:[#allocation2 + $0x8] sm:$0xc] %vm406_vm5, %v845_v56 }
0x156f   :  { %v1070_v6 = vld [vmem:[#allocation2] sm:$0xff] }
0x1570   :  { %3407 = vmatprep.mubr.msk.f32.mxu1 %vm194_vm4, %v1070_v6 }
0x15d8   :  { %v1067_v57 = vpop.permute.xlu0 %1066 }
0x15d9   :  { %1069 = vst.msk [vmem:[#allocation2 + $0x8] sm:$0xc0] %vm630_vm6, %v1067_v57 }
0x15e0   :  { %v1071_v58 = vld [vmem:[#allocation2 + $0x8] sm:$0xff] }
0x15e1   :  { %3408 = vmatmul.mubr.msk.f32.vlgmr.msra.gmra.mxu1 %vm194_vm4, %v1071_v58 }
0x15e2   :  { %3422 = vmatpush3.msra.mxu1 %v4187_v50  ;;  %3429 = vmatprep.mubr.msk.f32.mxu1 %vm3907_vm0, %v3906_v0 }
0x15e3   :  { %3423 = vmatprep.subr.mxu1 %v3906_v0 }
0x15e4   :  { %3424 = vmatpush3.msra.mxu1 %v4193_v51 }
0x15e5   :  { %3425 = vmatprep.subr.mxu1 %v3906_v0 }
0x15e6   :  { %3426 = vmatpush3.msra.mxu1 %v4196_v52 }
0x15e7   :  { %3427 = vmatprep.subr.mxu1 %v3906_v0 }
0x15e8   :  { %3428 = vmatpush3.msra.mxu1 %v4205_v53 }
0x15e9   :  { %3443 = vmatprep.subr.mxu1 %v3906_v0 }
0x16a1   :  { %v3409_v61 = vpop.f32.mrf.mxu1 }
0x16a2   :  { %v4240_v62 = vadd.f32 %v3409_v61, %v3126_v60 }
0x16a3   :  { %v1155_v63 = vpop.f32.mrf.mxu1 }
0x16a4   :  { %v4242_v1 = vadd.f32 %v3126_v60, %v1155_v63 }
0x16a6   :  { %v1238_v3 = vadd.f32 %v1234_v7, %v4242_v1 }
0x16a8   :  { %3682 = vtanh.f32 %v1238_v3  ;;  %v3129_v9 = vmul.f32 -1.442695, %v1238_v3 }
0x16aa   :  { %3684 = vpow2.f32 %v3129_v9 }
0x16b5   :  { %v3683_v4 = vpop.eup %3682 }
0x16b6   :  { %1248 = vrot.lane.b32.xlu1 %v3683_v4, %s3908_s17 }
0x16b7   :  { %v3685_v11 = vpop.eup %3684 }
0x16b8   :  { %v1242_v13 = vadd.f32 1.0, %v3685_v11 }
0x16ba   :  { %3686 = vrcp.f32 %v1242_v13 }
0x16c7   :  { %v3687_v14 = vpop.eup %3686 }
0x16c8   :  { %v1246_v17 = vmul.f32 0.0, %v3687_v14 }
0x1728   :  { %v1249_v15 = vpop.permute.xlu1 %1248 }
0x1729   :  { %v1251_v16 = vmul.f32 %v3687_v14, %v1249_v15 }
0x172b   :  { %1253 = vrot.lane.b32.xlu0 %v1251_v16, %s3909_s3 }
0x179d   :  { %v1254_v18 = vpop.permute.xlu0 %1253 }
0x179e   :  { %v1256_v19 = vadd.f32 %v1254_v18, %v1246_v17 }
0x17a0   :  { %3688 = vtanh.f32 %v1256_v19  ;;  %v1352_v35 = vrot.slane %v1256_v19, 6 }
0x17ad   :  { %v3689_v20 = vpop.eup %3688 }
0x17ae   :  { %1259 = vrot.lane.b32.xlu1 %v3689_v20, %s3908_s17 }
0x1820   :  { %v1260_v21 = vpop.permute.xlu1 %1259 }
0x1821   :  { %v1262_v22 = vmul.f32 %v3687_v14, %v1260_v21 }
0x1823   :  { %1264 = vrot.lane.b32.xlu0 %v1262_v22, %s3909_s3 }
0x1895   :  { %v1265_v23 = vpop.permute.xlu0 %1264 }
0x1896   :  { %1267 = vst.msk [vmem:[#allocation2] sm:$0x3] %vm297_vm3, %v1265_v23  ;;  %3430 = vmatmul.mubr.msk.f32.vlgmr.msra.gmra.mxu1 %vm194_vm4, %v1265_v23 }
0x1897   :  { %3444 = vmatpush3.msra.mxu1 %v4187_v50  ;;  %3451 = vmatprep.mubr.msk.f32.mxu1 %vm3907_vm0, %v3906_v0 }
0x1898   :  { %3445 = vmatprep.subr.mxu1 %v3906_v0 }
0x1899   :  { %3446 = vmatpush3.msra.mxu1 %v4193_v51 }
0x189a   :  { %3447 = vmatprep.subr.mxu1 %v3906_v0 }
0x189b   :  { %3448 = vmatpush3.msra.mxu1 %v4196_v52 }
0x189c   :  { %3449 = vmatprep.subr.mxu1 %v3906_v0 }
0x189d   :  { %3450 = vmatpush3.msra.mxu1 %v4205_v53 }
0x189e   :  { %3465 = vmatprep.subr.mxu1 %v3906_v0 }
0x1956   :  { %v1336_v24 = vpop.f32.mrf.mxu1 }
0x1957   :  { %v1341_v25 = vrot.slane %v1336_v24, 6 }
0x1958   :  { %v3431_v26 = vpop.f32.mrf.mxu1 }
0x1959   :  { %v1343_v27 = vadd.f32 %v1341_v25, %v4242_v1 }
0x195b   :  { %3690 = vtanh.f32 %v1343_v27  ;;  %v3131_v28 = vmul.f32 -1.442695, %v1343_v27 }
0x195d   :  { %3692 = vpow2.f32 %v3131_v28 }
0x1968   :  { %v3691_v12 = vpop.eup %3690 }
0x1969   :  { %1356 = vrot.lane.b32.xlu1 %v3691_v12, %s3908_s17 }
0x196a   :  { %v3693_v30 = vpop.eup %3692 }
0x196b   :  { %v1347_v31 = vadd.f32 1.0, %v3693_v30 }
0x196d   :  { %3694 = vrcp.f32 %v1347_v31 }
0x197a   :  { %v3695_v32 = vpop.eup %3694 }
0x197b   :  { %v1354_v36 = vmul.f32 %v3695_v32, %v1352_v35 }
0x19db   :  { %v1357_v33 = vpop.permute.xlu1 %1356 }
0x19dc   :  { %v1359_v34 = vmul.f32 %v3695_v32, %v1357_v33 }
0x19de   :  { %1361 = vrot.lane.b32.xlu0 %v1359_v34, %s3909_s3 }
0x1a50   :  { %v1362_v37 = vpop.permute.xlu0 %1361 }
0x1a51   :  { %v1364_v38 = vadd.f32 %v1362_v37, %v1354_v36 }
0x1a53   :  { %3696 = vtanh.f32 %v1364_v38  ;;  %v1463_v5 = vrot.slane %v1364_v38, 6 }
0x1a60   :  { %v3697_v39 = vpop.eup %3696 }
0x1a61   :  { %1367 = vrot.lane.b32.xlu1 %v3697_v39, %s3908_s17 }
0x1ad3   :  { %v1368_v40 = vpop.permute.xlu1 %1367 }
0x1ad4   :  { %v4265_v41 = vmul.f32 %v3695_v32, %v1368_v40 }
0x1ad6   :  { %v1376_v10 = vrot.slane %v4265_v41, 2 }
0x1ad8   :  { %1377 = vrot.lane.b32.xlu0 %v1376_v10, %s3909_s3 }
0x1b4a   :  { %v1378_v42 = vpop.permute.xlu0 %1377 }
0x1b4b   :  { %3441 = vmatmul.mubr.msk.f32.vlgmr.msra.gmra.mxu0 %vm194_vm4, %v1378_v42 }
0x1b4c   :  { %3455 = vmatpush3.msra.mxu0 %v4187_v50  ;;  %3462 = vmatprep.mubr.msk.f32.mxu0 %vm3907_vm0, %v3906_v0 }
0x1b4d   :  { %3456 = vmatprep.subr.mxu0 %v3906_v0 }
0x1b4e   :  { %3457 = vmatpush3.msra.mxu0 %v4193_v51 }
0x1b4f   :  { %3458 = vmatprep.subr.mxu0 %v3906_v0 }
0x1b50   :  { %3459 = vmatpush3.msra.mxu0 %v4196_v52 }
0x1b51   :  { %3460 = vmatprep.subr.mxu0 %v3906_v0 }
0x1b52   :  { %3461 = vmatpush3.msra.mxu0 %v4205_v53 }
0x1b53   :  { %3476 = vmatprep.subr.mxu0 %v3906_v0 }
0x1c0b   :  { %v1447_v43 = vpop.f32.mrf.mxu0 }
0x1c0c   :  { %v1452_v44 = vrot.slane %v1447_v43, 4 }
0x1c0d   :  { %v3442_v45 = vpop.f32.mrf.mxu0 }
0x1c0e   :  { %v1454_v46 = vadd.f32 %v1452_v44, %v4242_v1 }
0x1c10   :  { %3698 = vtanh.f32 %v1454_v46  ;;  %v3133_v29 = vmul.f32 -1.442695, %v1454_v46 }
0x1c12   :  { %3700 = vpow2.f32 %v3133_v29 }
0x1c1d   :  { %v3699_v47 = vpop.eup %3698 }
0x1c1e   :  { %1467 = vrot.lane.b32.xlu1 %v3699_v47, %s3908_s17 }
0x1c1f   :  { %v3701_v48 = vpop.eup %3700 }
0x1c20   :  { %v1458_v49 = vadd.f32 1.0, %v3701_v48 }
0x1c22   :  { %3702 = vrcp.f32 %v1458_v49 }
0x1c2f   :  { %v3703_v8 = vpop.eup %3702 }
0x1c30   :  { %v1465_v55 = vmul.f32 %v3703_v8, %v1463_v5 }
0x1c90   :  { %v1468_v2 = vpop.permute.xlu1 %1467 }
0x1c91   :  { %v1470_v54 = vmul.f32 %v3703_v8, %v1468_v2 }
0x1c93   :  { %1472 = vrot.lane.b32.xlu0 %v1470_v54, %s3909_s3 }
0x1d05   :  { %v1473_v56 = vpop.permute.xlu0 %1472 }
0x1d06   :  { %v1475_v6 = vadd.f32 %v1473_v56, %v1465_v55 }
0x1d08   :  { %3704 = vtanh.f32 %v1475_v6  ;;  %v1574_v18 = vrot.slane %v1475_v6, 6 }
0x1d15   :  { %v3705_v57 = vpop.eup %3704 }
0x1d16   :  { %1478 = vrot.lane.b32.xlu1 %v3705_v57, %s3908_s17 }
0x1d88   :  { %v1479_v58 = vpop.permute.xlu1 %1478 }
0x1d89   :  { %v4284_v7 = vmul.f32 %v3703_v8, %v1479_v58 }
0x1d8b   :  { %v1487_v59 = vrot.slane %v4284_v7, 4 }
0x1d8d   :  { %1488 = vrot.lane.b32.xlu0 %v1487_v59, %s3909_s3 }
0x1dff   :  { %v1489_v60 = vpop.permute.xlu0 %1488 }
0x1e00   :  { %3452 = vmatmul.mubr.msk.f32.vlgmr.msra.gmra.mxu1 %vm194_vm4, %v1489_v60 }
0x1e01   :  { %3466 = vmatpush3.msra.mxu1 %v4187_v50  ;;  %3473 = vmatprep.mubr.msk.f32.mxu1 %vm3907_vm0, %v3906_v0 }
0x1e02   :  { %3467 = vmatprep.subr.mxu1 %v3906_v0 }
0x1e03   :  { %3468 = vmatpush3.msra.mxu1 %v4193_v51 }
0x1e04   :  { %3469 = vmatprep.subr.mxu1 %v3906_v0 }
0x1e05   :  { %3470 = vmatpush3.msra.mxu1 %v4196_v52 }
0x1e06   :  { %3471 = vmatprep.subr.mxu1 %v3906_v0 }
0x1e07   :  { %3472 = vmatpush3.msra.mxu1 %v4205_v53 }
0x1e08   :  { %3487 = vmatprep.subr.mxu1 %v3906_v0 }
0x1ec0   :  { %v1558_v61 = vpop.f32.mrf.mxu1 }
0x1ec1   :  { %v1563_v63 = vrot.slane %v1558_v61, 2 }
0x1ec2   :  { %v3453_v3 = vpop.f32.mrf.mxu1 }
0x1ec3   :  { %v1565_v4 = vadd.f32 %v1563_v63, %v4242_v1 }
0x1ec5   :  { %3706 = vtanh.f32 %v1565_v4  ;;  %v3135_v11 = vmul.f32 -1.442695, %v1565_v4 }
0x1ec7   :  { %3708 = vpow2.f32 %v3135_v11 }
0x1ed2   :  { %v3707_v9 = vpop.eup %3706 }
0x1ed3   :  { %1578 = vrot.lane.b32.xlu1 %v3707_v9, %s3908_s17 }
0x1ed4   :  { %v3709_v13 = vpop.eup %3708 }
0x1ed5   :  { %v1569_v14 = vadd.f32 1.0, %v3709_v13 }
0x1ed7   :  { %3710 = vrcp.f32 %v1569_v14 }
0x1ee4   :  { %v3711_v15 = vpop.eup %3710 }
0x1ee5   :  { %v1576_v19 = vmul.f32 %v3711_v15, %v1574_v18 }
0x1f45   :  { %v1579_v16 = vpop.permute.xlu1 %1578 }
0x1f46   :  { %v1581_v17 = vmul.f32 %v3711_v15, %v1579_v16 }
0x1f48   :  { %1583 = vrot.lane.b32.xlu0 %v1581_v17, %s3909_s3 }
0x1fba   :  { %v1584_v20 = vpop.permute.xlu0 %1583 }
0x1fbb   :  { %v1586_v21 = vadd.f32 %v1584_v20, %v1576_v19 }
0x1fbd   :  { %3712 = vtanh.f32 %v1586_v21  ;;  %v1682_v36 = vrot.slane %v1586_v21, 6 }
0x1fca   :  { %v3713_v1 = vpop.eup %3712 }
0x1fcb   :  { %1589 = vrot.lane.b32.xlu1 %v3713_v1, %s3908_s17 }
0x203d   :  { %v1590_v22 = vpop.permute.xlu1 %1589 }
0x203e   :  { %v4303_v23 = vmul.f32 %v3711_v15, %v1590_v22 }
0x2040   :  { %v1598_v24 = vrot.slane %v4303_v23, 6 }
0x2042   :  { %1599 = vrot.lane.b32.xlu0 %v1598_v24, %s3909_s3 }
0x20b4   :  { %v1600_v25 = vpop.permute.xlu0 %1599 }
0x20b5   :  { %3463 = vmatmul.mubr.msk.f32.vlgmr.msra.gmra.mxu0 %vm194_vm4, %v1600_v25 }
0x20b6   :  { %3477 = vmatpush3.msra.mxu0 %v4187_v50  ;;  %3484 = vmatprep.mubr.msk.f32.mxu0 %vm3907_vm0, %v3906_v0 }
0x20b7   :  { %3478 = vmatprep.subr.mxu0 %v3906_v0 }
0x20b8   :  { %3479 = vmatpush3.msra.mxu0 %v4193_v51 }
0x20b9   :  { %3480 = vmatprep.subr.mxu0 %v3906_v0 }
0x20ba   :  { %3481 = vmatpush3.msra.mxu0 %v4196_v52 }
0x20bb   :  { %3482 = vmatprep.subr.mxu0 %v3906_v0 }
0x20bc   :  { %3483 = vmatpush3.msra.mxu0 %v4205_v53 }
0x2175   :  { %v1669_v26 = vpop.f32.mrf.mxu0 }
0x2176   :  { %v1673_v27 = vadd.f32 %v1669_v26, %v4240_v62 }
0x2177   :  { %v3464_v12 = vpop.f32.mrf.mxu0 }
0x2178   :  { %3714 = vtanh.f32 %v1673_v27  ;;  %v3137_v30 = vmul.f32 -1.442695, %v1673_v27 }
0x217a   :  { %3716 = vpow2.f32 %v3137_v30 }
0x2185   :  { %v3715_v28 = vpop.eup %3714 }
0x2186   :  { %1686 = vrot.lane.b32.xlu1 %v3715_v28, %s3908_s17 }
0x2187   :  { %v3717_v31 = vpop.eup %3716 }
0x2188   :  { %v1677_v32 = vadd.f32 1.0, %v3717_v31 }
0x218a   :  { %3718 = vrcp.f32 %v1677_v32 }
0x2197   :  { %v3719_v33 = vpop.eup %3718 }
0x2198   :  { %v1684_v37 = vmul.f32 %v3719_v33, %v1682_v36 }
0x21f8   :  { %v1687_v34 = vpop.permute.xlu1 %1686 }
0x21f9   :  { %v1689_v35 = vmul.f32 %v3719_v33, %v1687_v34 }
0x21fb   :  { %1691 = vrot.lane.b32.xlu0 %v1689_v35, %s3909_s3 }
0x226d   :  { %v1692_v38 = vpop.permute.xlu0 %1691 }
0x226e   :  { %v1694_v39 = vadd.f32 %v1692_v38, %v1684_v37 }
0x2270   :  { %3720 = vtanh.f32 %v1694_v39 }
0x227d   :  { %v3721_v40 = vpop.eup %3720 }
0x227e   :  { %1697 = vrot.lane.b32.xlu1 %v3721_v40, %s3908_s17 }
0x22f0   :  { %v1698_v10 = vpop.permute.xlu1 %1697 }
0x22f1   :  { %v1700_v42 = vmul.f32 %v3719_v33, %v1698_v10 }
0x22f3   :  { %1702 = vrot.lane.b32.xlu0 %v1700_v42, %s3909_s3  ;;  %v2040_v42 = vld [vmem:[#allocation5 + $0x10] sm:$0xff] }
0x2365   :  { %v1703_v43 = vpop.permute.xlu0 %1702 }
0x2366   :  { %1705 = vst.msk [vmem:[#allocation2 + $0x8] sm:$0x3] %vm297_vm3, %v1703_v43  ;;  %3474 = vmatmul.mubr.msk.f32.vlgmr.msra.gmra.mxu1 %vm194_vm4, %v1703_v43  ;;  %v4367_v43 = vld [vmem:[#allocation7 + $0x18] sm:$0xff] }
0x2367   :  { %3488 = vmatpush3.msra.mxu1 %v4187_v50  ;;  %3495 = vmatprep.mubr.msk.f32.mxu1 %vm3907_vm0, %v3906_v0 }
0x2368   :  { %3489 = vmatprep.subr.mxu1 %v3906_v0 }
0x2369   :  { %3490 = vmatpush3.msra.mxu1 %v4193_v51 }
0x236a   :  { %3491 = vmatprep.subr.mxu1 %v3906_v0 }
0x236b   :  { %3492 = vmatpush3.msra.mxu1 %v4196_v52 }
0x236c   :  { %3493 = vmatprep.subr.mxu1 %v3906_v0 }
0x236d   :  { %3494 = vmatpush3.msra.mxu1 %v4205_v53  ;;  %v1790_v53 = vrot.slane %v1694_v39, 6 }
0x236e   :  { %3509 = vmatprep.subr.mxu1 %v3906_v0 }
0x2426   :  { %v1774_v44 = vpop.f32.mrf.mxu1 }
0x2427   :  { %v1779_v45 = vrot.slane %v1774_v44, 6  ;;  %v2039_v44 = vld [vmem:[#allocation5 + $0x8] sm:$0xff] }
0x2428   :  { %v3475_v50 = vpop.f32.mrf.mxu1 }
0x2429   :  { %v1781_v46 = vadd.f32 %v1779_v45, %v4240_v62  ;;  %v4370_v45 = vld [vmem:[#allocation7 + $0x10] sm:$0xff]  ;;  %v4373_v50 = vld [vmem:[#allocation7 + $0x8] sm:$0xff] }
0x242b   :  { %3722 = vtanh.f32 %v1781_v46  ;;  %v3139_v51 = vmul.f32 -1.442695, %v1781_v46  ;;  %v4379_v46 = vld [vmem:[#allocation7] sm:$0xff] }
0x242d   :  { %3724 = vpow2.f32 %v3139_v51 }
0x2438   :  { %v3723_v47 = vpop.eup %3722 }
0x2439   :  { %1794 = vrot.lane.b32.xlu1 %v3723_v47, %s3908_s17 }
0x243a   :  { %v3725_v29 = vpop.eup %3724 }
0x243b   :  { %v1785_v48 = vadd.f32 1.0, %v3725_v29 }
0x243d   :  { %3726 = vrcp.f32 %v1785_v48 }
0x244a   :  { %v3727_v52 = vpop.eup %3726 }
0x244b   :  { %v1792_v2 = vmul.f32 %v3727_v52, %v1790_v53 }
0x24ab   :  { %v1795_v49 = vpop.permute.xlu1 %1794 }
0x24ac   :  { %v1797_v8 = vmul.f32 %v3727_v52, %v1795_v49 }
0x24ae   :  { %1799 = vrot.lane.b32.xlu0 %v1797_v8, %s3909_s3 }
0x2520   :  { %v1800_v54 = vpop.permute.xlu0 %1799 }
0x2521   :  { %v1802_v5 = vadd.f32 %v1800_v54, %v1792_v2  ;;  %v3144_v54 = vld [vmem:[%s4573_s9] ss:$0 sm:$0xff] }
0x2523   :  { %3728 = vtanh.f32 %v1802_v5  ;;  %v1901_v16 = vrot.slane %v1802_v5, 6 }
0x2530   :  { %v3729_v55 = vpop.eup %3728 }
0x2531   :  { %1805 = vrot.lane.b32.xlu1 %v3729_v55, %s3908_s17 }
0x25a3   :  { %v1806_v56 = vpop.permute.xlu1 %1805 }
0x25a4   :  { %v4338_v6 = vmul.f32 %v3727_v52, %v1806_v56 }
0x25a6   :  { %v1814_v57 = vrot.slane %v4338_v6, 2 }
0x25a8   :  { %1815 = vrot.lane.b32.xlu0 %v1814_v57, %s3909_s3 }
0x261a   :  { %v1816_v58 = vpop.permute.xlu0 %1815 }
0x261b   :  { %3485 = vmatmul.mubr.msk.f32.vlgmr.msra.gmra.mxu0 %vm194_vm4, %v1816_v58 }
0x26db   :  { %v1885_v59 = vpop.f32.mrf.mxu0 }
0x26dc   :  { %v1890_v60 = vrot.slane %v1885_v59, 4 }
0x26dd   :  { %v3486_v61 = vpop.f32.mrf.mxu0 }
0x26de   :  { %v1892_v63 = vadd.f32 %v1890_v60, %v4240_v62 }
0x26e0   :  { %3730 = vtanh.f32 %v1892_v63  ;;  %v3141_v4 = vmul.f32 -1.442695, %v1892_v63 }
0x26e2   :  { %3732 = vpow2.f32 %v3141_v4 }
0x26ed   :  { %v3731_v3 = vpop.eup %3730 }
0x26ee   :  { %1905 = vrot.lane.b32.xlu1 %v3731_v3, %s3908_s17 }
0x26ef   :  { %v3733_v9 = vpop.eup %3732 }
0x26f0   :  { %v1896_v11 = vadd.f32 1.0, %v3733_v9 }
0x26f2   :  { %3734 = vrcp.f32 %v1896_v11 }
0x26ff   :  { %v3735_v13 = vpop.eup %3734 }
0x2700   :  { %v1903_v17 = vmul.f32 %v3735_v13, %v1901_v16 }
0x2760   :  { %v1906_v14 = vpop.permute.xlu1 %1905 }
0x2761   :  { %v1908_v15 = vmul.f32 %v3735_v13, %v1906_v14 }
0x2763   :  { %1910 = vrot.lane.b32.xlu0 %v1908_v15, %s3909_s3 }
0x27d5   :  { %v1911_v18 = vpop.permute.xlu0 %1910 }
0x27d6   :  { %v1913_v19 = vadd.f32 %v1911_v18, %v1903_v17 }
0x27d8   :  { %3736 = vtanh.f32 %v1913_v19 }
0x27e5   :  { %v3737_v20 = vpop.eup %3736 }
0x27e6   :  { %1916 = vrot.lane.b32.xlu1 %v3737_v20, %s3908_s17 }
0x2858   :  { %v1917_v21 = vpop.permute.xlu1 %1916 }
0x2859   :  { %v1919_v1 = vmul.f32 %v3735_v13, %v1917_v21 }
0x285b   :  { %v1925_v22 = vrot.slane %v1919_v1, 4 }
0x285d   :  { %1926 = vrot.lane.b32.xlu0 %v1925_v22, %s3909_s3 }
0x28cf   :  { %v1927_v24 = vpop.permute.xlu0 %1926 }
0x28d0   :  { %3496 = vmatmul.mubr.msk.f32.vlgmr.msra.gmra.mxu1 %vm194_vm4, %v1927_v24 }
0x28d1   :  { %3517 = vmatprep.mubr.msk.f32.mxu1 %vm3907_vm0, %v3906_v0  ;;  %3510 = vmatpush3.msra.mxu1 %v4367_v43 }
0x28d2   :  { %3511 = vmatprep.subr.mxu1 %v3906_v0 }
0x28d3   :  { %3512 = vmatpush3.msra.mxu1 %v4370_v45 }
0x28d4   :  { %3513 = vmatprep.subr.mxu1 %v3906_v0 }
0x28d5   :  { %3514 = vmatpush3.msra.mxu1 %v4373_v50 }
0x28d6   :  { %3515 = vmatprep.subr.mxu1 %v3906_v0 }
0x28d7   :  { %3516 = vmatpush3.msra.mxu1 %v4379_v46 }
0x28d8   :  { %3518 = vmatmul.mubr.f32.vlgmr.msra.gmra.mxu1 %v3906_v0  ;;  %3531 = vmatprep.subr.mxu1 %v3906_v0 }
0x28d9   :  { %3532 = vmatpush3.msra.mxu1 %v4367_v43  ;;  %3539 = vmatprep.mubr.msk.f32.mxu1 %vm3907_vm0, %v3906_v0 }
0x28da   :  { %3533 = vmatprep.subr.mxu1 %v3906_v0 }
0x28db   :  { %3534 = vmatpush3.msra.mxu1 %v4370_v45 }
0x28dc   :  { %3535 = vmatprep.subr.mxu1 %v3906_v0 }
0x28dd   :  { %3536 = vmatpush3.msra.mxu1 %v4373_v50 }
0x28de   :  { %3537 = vmatprep.subr.mxu1 %v3906_v0 }
0x28df   :  { %3538 = vmatpush3.msra.mxu1 %v4379_v46 }
0x28e0   :  { %3553 = vmatprep.subr.mxu1 %v3906_v0 }
0x2990   :  { %v1996_v25 = vpop.f32.mrf.mxu1 }
0x2991   :  { %v2001_v26 = vrot.slane %v1996_v25, 2 }
0x2992   :  { %v3497_v27 = vpop.f32.mrf.mxu1 }
0x2993   :  { %v2003_v12 = vadd.f32 %v2001_v26, %v4240_v62  ;;  %v2012_v62 = vrot.slane %v1913_v19, 6 }
0x2995   :  { %3738 = vtanh.f32 %v2003_v12  ;;  %v3143_v30 = vmul.f32 -1.442695, %v2003_v12 }
0x2997   :  { %3740 = vpow2.f32 %v3143_v30 }
0x2998   :  { %v2200_v53 = vpop.f32.mrf.mxu1 }
0x299a   :  { %v3519_v2 = vpop.f32.mrf.mxu1 }
0x29a2   :  { %v3739_v28 = vpop.eup %3738 }
0x29a3   :  { %2016 = vrot.lane.b32.xlu1 %v3739_v28, %s3908_s17 }
0x29a4   :  { %v3741_v31 = vpop.eup %3740 }
0x29a5   :  { %v2007_v32 = vadd.f32 1.0, %v3741_v31 }
0x29a7   :  { %3742 = vrcp.f32 %v2007_v32 }
0x29b4   :  { %v3743_v33 = vpop.eup %3742 }
0x29b5   :  { %v2014_v36 = vmul.f32 %v3743_v33, %v2012_v62 }
0x2a15   :  { %v2017_v34 = vpop.permute.xlu1 %2016 }
0x2a16   :  { %v2019_v35 = vmul.f32 %v3743_v33, %v2017_v34 }
0x2a18   :  { %2021 = vrot.lane.b32.xlu0 %v2019_v35, %s3909_s3 }
0x2a1c   :  { %1372 = vrot.lane.b32.xlu0 %v4265_v41, %s3909_s3 }
0x2a20   :  { %1594 = vrot.lane.b32.xlu0 %v4303_v23, %s3909_s3  ;;  %v2041_v23 = vld [vmem:[#allocation5 + $0x18] sm:$0xff] }
0x2a21   :  { %3498 = vmatprep.subr.mxu0 %v2041_v23 }
0x2a22   :  { %3499 = vmatpush3.msra.mxu0 %v2041_v23 }
0x2a23   :  { %3500 = vmatprep.subr.mxu0 %v2040_v42 }
0x2a24   :  { %1921 = vrot.lane.b32.xlu0 %v1919_v1, %s3909_s3  ;;  %3501 = vmatpush3.msra.mxu0 %v2040_v42 }
0x2a25   :  { %3502 = vmatprep.subr.mxu0 %v2039_v44 }
0x2a26   :  { %3503 = vmatpush3.msra.mxu0 %v2039_v44 }
0x2a8a   :  { %v2022_v37 = vpop.permute.xlu0 %2021 }
0x2a8b   :  { %v2024_v38 = vadd.f32 %v2022_v37, %v2014_v36 }
0x2a8d   :  { %3744 = vtanh.f32 %v2024_v38 }
0x2a8e   :  { %v1373_v39 = vpop.permute.xlu0 %1372 }
0x2a8f   :  { %1375 = vst.msk [vmem:[#allocation2] sm:$0xc] %vm406_vm5, %v1373_v39 }
0x2a92   :  { %v1595_v40 = vpop.permute.xlu0 %1594 }
0x2a93   :  { %1597 = vst.msk [vmem:[#allocation2] sm:$0xc0] %vm630_vm6, %v1595_v40 }
0x2a96   :  { %v1922_v10 = vpop.permute.xlu0 %1921 }
0x2a97   :  { %1924 = vst.msk [vmem:[#allocation2 + $0x8] sm:$0x30] %vm518_vm7, %v1922_v10 }
0x2a9a   :  { %v3745_v41 = vpop.eup %3744 }
0x2a9b   :  { %2027 = vrot.lane.b32.xlu1 %v3745_v41, %s3908_s17 }
0x2a9f   :  { %1483 = vrot.lane.b32.xlu1 %v4284_v7, %s3909_s3  ;;  %v2038_v7 = vld [vmem:[#allocation5] sm:$0xff] }
0x2aa0   :  { %3504 = vmatprep.subr.mxu0 %v2038_v7 }
0x2aa1   :  { %3505 = vmatpush3.msra.mxu0 %v2038_v7 }
0x2aa2   :  { %3520 = vmatprep.subr.mxu0 %v3906_v0 }
0x2aa3   :  { %1810 = vrot.lane.b32.xlu1 %v4338_v6, %s3909_s3 }
0x2b0d   :  { %v2028_v47 = vpop.permute.xlu1 %2027 }
0x2b0e   :  { %v2030_v51 = vmul.f32 %v3743_v33, %v2028_v47 }
0x2b10   :  { %2032 = vrot.lane.b32.xlu1 %v2030_v51, %s3909_s3 }
0x2b11   :  { %v1484_v29 = vpop.permute.xlu1 %1483 }
0x2b12   :  { %1486 = vst.msk [vmem:[#allocation2] sm:$0x30] %vm518_vm7, %v1484_v29 }
0x2b15   :  { %v1811_v48 = vpop.permute.xlu1 %1810 }
0x2b16   :  { %1813 = vst.msk [vmem:[#allocation2 + $0x8] sm:$0xc] %vm406_vm5, %v1811_v48 }
0x2b19   :  { %v2036_v52 = vld [vmem:[#allocation2] sm:$0xff] }
0x2b1a   :  { %3506 = vmatprep.mubr.msk.f32.mxu0 %vm194_vm4, %v2036_v52 }
0x2b82   :  { %v2033_v49 = vpop.permute.xlu1 %2032 }
0x2b83   :  { %2035 = vst.msk [vmem:[#allocation2 + $0x8] sm:$0xc0] %vm630_vm6, %v2033_v49 }
0x2b8a   :  { %v2037_v8 = vld [vmem:[#allocation2 + $0x8] sm:$0xff] }
0x2b8b   :  { %3507 = vmatmul.mubr.msk.f32.vlgmr.msra.gmra.mxu0 %vm194_vm4, %v2037_v8 }
0x2b8c   :  { %3521 = vmatpush3.msra.mxu0 %v4367_v43  ;;  %3528 = vmatprep.mubr.msk.f32.mxu0 %vm3907_vm0, %v3906_v0 }
0x2b8d   :  { %3522 = vmatprep.subr.mxu0 %v3906_v0 }
0x2b8e   :  { %3523 = vmatpush3.msra.mxu0 %v4370_v45 }
0x2b8f   :  { %3524 = vmatprep.subr.mxu0 %v3906_v0 }
0x2b90   :  { %3525 = vmatpush3.msra.mxu0 %v4373_v50 }
0x2b91   :  { %3526 = vmatprep.subr.mxu0 %v3906_v0 }
0x2b92   :  { %3527 = vmatpush3.msra.mxu0 %v4379_v46 }
0x2b93   :  { %3542 = vmatprep.subr.mxu0 %v3906_v0 }
0x2c4b   :  { %v3508_v5 = vpop.f32.mrf.mxu0 }
0x2c4c   :  { %v4414_v55 = vadd.f32 %v3508_v5, %v3144_v54 }
0x2c4d   :  { %v2121_v56 = vpop.f32.mrf.mxu0 }
0x2c4e   :  { %v4416_v6 = vadd.f32 %v3144_v54, %v2121_v56 }
0x2c50   :  { %v2204_v57 = vadd.f32 %v2200_v53, %v4416_v6 }
0x2c52   :  { %3746 = vtanh.f32 %v2204_v57  ;;  %v3147_v59 = vmul.f32 -1.442695, %v2204_v57 }
0x2c54   :  { %3748 = vpow2.f32 %v3147_v59 }
0x2c5f   :  { %v3747_v58 = vpop.eup %3746 }
0x2c60   :  { %2214 = vrot.lane.b32.xlu0 %v3747_v58, %s3908_s17 }
0x2c61   :  { %v3749_v60 = vpop.eup %3748 }
0x2c62   :  { %v2208_v61 = vadd.f32 1.0, %v3749_v60 }
0x2c64   :  { %3750 = vrcp.f32 %v2208_v61 }
0x2c71   :  { %v3751_v63 = vpop.eup %3750 }
0x2c72   :  { %v2212_v9 = vmul.f32 0.0, %v3751_v63 }
0x2cd2   :  { %v2215_v3 = vpop.permute.xlu0 %2214 }
0x2cd3   :  { %v2217_v4 = vmul.f32 %v3751_v63, %v2215_v3 }
0x2cd5   :  { %2219 = vrot.lane.b32.xlu1 %v2217_v4, %s3909_s3 }
0x2d47   :  { %v2220_v11 = vpop.permute.xlu1 %2219 }
0x2d48   :  { %v2222_v13 = vadd.f32 %v2220_v11, %v2212_v9 }
0x2d4a   :  { %3752 = vtanh.f32 %v2222_v13  ;;  %v2318_v28 = vrot.slane %v2222_v13, 6 }
0x2d57   :  { %v3753_v14 = vpop.eup %3752 }
0x2d58   :  { %2225 = vrot.lane.b32.xlu0 %v3753_v14, %s3908_s17 }
0x2dca   :  { %v2226_v15 = vpop.permute.xlu0 %2225 }
0x2dcb   :  { %v2228_v16 = vmul.f32 %v3751_v63, %v2226_v15 }
0x2dcd   :  { %2230 = vrot.lane.b32.xlu1 %v2228_v16, %s3909_s3 }
0x2e3f   :  { %v2231_v17 = vpop.permute.xlu1 %2230 }
0x2e40   :  { %2233 = vst.msk [vmem:[#allocation2] sm:$0x3] %vm297_vm3, %v2231_v17  ;;  %3529 = vmatmul.mubr.msk.f32.vlgmr.msra.gmra.mxu0 %vm194_vm4, %v2231_v17 }
0x2e41   :  { %3543 = vmatpush3.msra.mxu0 %v4367_v43  ;;  %3550 = vmatprep.mubr.msk.f32.mxu0 %vm3907_vm0, %v3906_v0 }
0x2e42   :  { %3544 = vmatprep.subr.mxu0 %v3906_v0 }
0x2e43   :  { %3545 = vmatpush3.msra.mxu0 %v4370_v45 }
0x2e44   :  { %3546 = vmatprep.subr.mxu0 %v3906_v0 }
0x2e45   :  { %3547 = vmatpush3.msra.mxu0 %v4373_v50 }
0x2e46   :  { %3548 = vmatprep.subr.mxu0 %v3906_v0 }
0x2e47   :  { %3549 = vmatpush3.msra.mxu0 %v4379_v46 }
0x2e48   :  { %3564 = vmatprep.subr.mxu0 %v3906_v0 }
0x2f00   :  { %v2302_v18 = vpop.f32.mrf.mxu0 }
0x2f01   :  { %v2307_v19 = vrot.slane %v2302_v18, 6 }
0x2f02   :  { %v3530_v20 = vpop.f32.mrf.mxu0 }
0x2f03   :  { %v2309_v21 = vadd.f32 %v2307_v19, %v4416_v6 }
0x2f05   :  { %3754 = vtanh.f32 %v2309_v21  ;;  %v3149_v22 = vmul.f32 -1.442695, %v2309_v21 }
0x2f07   :  { %3756 = vpow2.f32 %v3149_v22 }
0x2f12   :  { %v3755_v1 = vpop.eup %3754 }
0x2f13   :  { %2322 = vrot.lane.b32.xlu0 %v3755_v1, %s3908_s17 }
0x2f14   :  { %v3757_v24 = vpop.eup %3756 }
0x2f15   :  { %v2313_v25 = vadd.f32 1.0, %v3757_v24 }
0x2f17   :  { %3758 = vrcp.f32 %v2313_v25 }
0x2f24   :  { %v3759_v26 = vpop.eup %3758 }
0x2f25   :  { %v2320_v30 = vmul.f32 %v3759_v26, %v2318_v28 }
0x2f85   :  { %v2323_v27 = vpop.permute.xlu0 %2322 }
0x2f86   :  { %v2325_v12 = vmul.f32 %v3759_v26, %v2323_v27 }
0x2f88   :  { %2327 = vrot.lane.b32.xlu1 %v2325_v12, %s3909_s3 }
0x2ffa   :  { %v2328_v31 = vpop.permute.xlu1 %2327 }
0x2ffb   :  { %v2330_v32 = vadd.f32 %v2328_v31, %v2320_v30 }
0x2ffd   :  { %3760 = vtanh.f32 %v2330_v32  ;;  %v2429_v51 = vrot.slane %v2330_v32, 6 }
0x300a   :  { %v3761_v33 = vpop.eup %3760 }
0x300b   :  { %2333 = vrot.lane.b32.xlu0 %v3761_v33, %s3908_s17 }
0x307d   :  { %v2334_v34 = vpop.permute.xlu0 %2333 }
0x307e   :  { %v4439_v35 = vmul.f32 %v3759_v26, %v2334_v34 }
0x3080   :  { %v2342_v62 = vrot.slane %v4439_v35, 2 }
0x3082   :  { %2343 = vrot.lane.b32.xlu1 %v2342_v62, %s3909_s3 }
0x30f4   :  { %v2344_v36 = vpop.permute.xlu1 %2343 }
0x30f5   :  { %3540 = vmatmul.mubr.msk.f32.vlgmr.msra.gmra.mxu1 %vm194_vm4, %v2344_v36 }
0x30f6   :  { %3554 = vmatpush3.msra.mxu1 %v4367_v43  ;;  %3561 = vmatprep.mubr.msk.f32.mxu1 %vm3907_vm0, %v3906_v0 }
0x30f7   :  { %3555 = vmatprep.subr.mxu1 %v3906_v0 }
0x30f8   :  { %3556 = vmatpush3.msra.mxu1 %v4370_v45 }
0x30f9   :  { %3557 = vmatprep.subr.mxu1 %v3906_v0 }
0x30fa   :  { %3558 = vmatpush3.msra.mxu1 %v4373_v50 }
0x30fb   :  { %3559 = vmatprep.subr.mxu1 %v3906_v0 }
0x30fc   :  { %3560 = vmatpush3.msra.mxu1 %v4379_v46 }
0x30fd   :  { %3575 = vmatprep.subr.mxu1 %v3906_v0 }
0x31b5   :  { %v2413_v37 = vpop.f32.mrf.mxu1 }
0x31b6   :  { %v2418_v38 = vrot.slane %v2413_v37, 4 }
0x31b7   :  { %v3541_v39 = vpop.f32.mrf.mxu1 }
0x31b8   :  { %v2420_v40 = vadd.f32 %v2418_v38, %v4416_v6 }
0x31ba   :  { %3762 = vtanh.f32 %v2420_v40  ;;  %v3151_v41 = vmul.f32 -1.442695, %v2420_v40 }
0x31bc   :  { %3764 = vpow2.f32 %v3151_v41 }
0x31c7   :  { %v3763_v10 = vpop.eup %3762 }
0x31c8   :  { %2433 = vrot.lane.b32.xlu0 %v3763_v10, %s3908_s17 }
0x31c9   :  { %v3765_v23 = vpop.eup %3764 }
0x31ca   :  { %v2424_v42 = vadd.f32 1.0, %v3765_v23 }
0x31cc   :  { %3766 = vrcp.f32 %v2424_v42 }
0x31d9   :  { %v3767_v44 = vpop.eup %3766 }
0x31da   :  { %v2431_v29 = vmul.f32 %v3767_v44, %v2429_v51 }
0x323a   :  { %v2434_v7 = vpop.permute.xlu0 %2433 }
0x323b   :  { %v2436_v47 = vmul.f32 %v3767_v44, %v2434_v7 }
0x323d   :  { %2438 = vrot.lane.b32.xlu1 %v2436_v47, %s3909_s3 }
0x32af   :  { %v2439_v48 = vpop.permute.xlu1 %2438 }
0x32b0   :  { %v2441_v52 = vadd.f32 %v2439_v48, %v2431_v29 }
0x32b2   :  { %3768 = vtanh.f32 %v2441_v52  ;;  %v2540_v11 = vrot.slane %v2441_v52, 6 }
0x32bf   :  { %v3769_v49 = vpop.eup %3768 }
0x32c0   :  { %2444 = vrot.lane.b32.xlu0 %v3769_v49, %s3908_s17 }
0x3332   :  { %v2445_v8 = vpop.permute.xlu0 %2444 }
0x3333   :  { %v4458_v53 = vmul.f32 %v3767_v44, %v2445_v8 }
0x3335   :  { %v2453_v2 = vrot.slane %v4458_v53, 4 }
0x3337   :  { %2454 = vrot.lane.b32.xlu1 %v2453_v2, %s3909_s3 }
0x33a9   :  { %v2455_v54 = vpop.permute.xlu1 %2454 }
0x33aa   :  { %3551 = vmatmul.mubr.msk.f32.vlgmr.msra.gmra.mxu0 %vm194_vm4, %v2455_v54 }
0x33ab   :  { %3565 = vmatpush3.msra.mxu0 %v4367_v43  ;;  %3572 = vmatprep.mubr.msk.f32.mxu0 %vm3907_vm0, %v3906_v0 }
0x33ac   :  { %3566 = vmatprep.subr.mxu0 %v3906_v0 }
0x33ad   :  { %3567 = vmatpush3.msra.mxu0 %v4370_v45 }
0x33ae   :  { %3568 = vmatprep.subr.mxu0 %v3906_v0 }
0x33af   :  { %3569 = vmatpush3.msra.mxu0 %v4373_v50 }
0x33b0   :  { %3570 = vmatprep.subr.mxu0 %v3906_v0 }
0x33b1   :  { %3571 = vmatpush3.msra.mxu0 %v4379_v46 }
0x33b2   :  { %3586 = vmatprep.subr.mxu0 %v3906_v0 }
0x346a   :  { %v2524_v5 = vpop.f32.mrf.mxu0 }
0x346b   :  { %v2529_v56 = vrot.slane %v2524_v5, 2 }
0x346c   :  { %v3552_v57 = vpop.f32.mrf.mxu0 }
0x346d   :  { %v2531_v58 = vadd.f32 %v2529_v56, %v4416_v6 }
0x346f   :  { %3770 = vtanh.f32 %v2531_v58  ;;  %v3153_v60 = vmul.f32 -1.442695, %v2531_v58 }
0x3471   :  { %3772 = vpow2.f32 %v3153_v60 }
0x347c   :  { %v3771_v59 = vpop.eup %3770 }
0x347d   :  { %2544 = vrot.lane.b32.xlu0 %v3771_v59, %s3908_s17 }
0x347e   :  { %v3773_v61 = vpop.eup %3772 }
0x347f   :  { %v2535_v63 = vadd.f32 1.0, %v3773_v61 }
0x3481   :  { %3774 = vrcp.f32 %v2535_v63 }
0x348e   :  { %v3775_v3 = vpop.eup %3774 }
0x348f   :  { %v2542_v13 = vmul.f32 %v3775_v3, %v2540_v11 }
0x34ef   :  { %v2545_v4 = vpop.permute.xlu0 %2544 }
0x34f0   :  { %v2547_v9 = vmul.f32 %v3775_v3, %v2545_v4 }
0x34f2   :  { %2549 = vrot.lane.b32.xlu1 %v2547_v9, %s3909_s3 }
0x3564   :  { %v2550_v14 = vpop.permute.xlu1 %2549 }
0x3565   :  { %v2552_v15 = vadd.f32 %v2550_v14, %v2542_v13 }
0x3567   :  { %3776 = vtanh.f32 %v2552_v15  ;;  %v2648_v30 = vrot.slane %v2552_v15, 6 }
0x3574   :  { %v3777_v6 = vpop.eup %3776 }
0x3575   :  { %2555 = vrot.lane.b32.xlu0 %v3777_v6, %s3908_s17 }
0x35e7   :  { %v2556_v16 = vpop.permute.xlu0 %2555 }
0x35e8   :  { %v4477_v17 = vmul.f32 %v3775_v3, %v2556_v16 }
0x35ea   :  { %v2564_v18 = vrot.slane %v4477_v17, 6 }
0x35ec   :  { %2565 = vrot.lane.b32.xlu1 %v2564_v18, %s3909_s3 }
0x365e   :  { %v2566_v19 = vpop.permute.xlu1 %2565 }
0x365f   :  { %3562 = vmatmul.mubr.msk.f32.vlgmr.msra.gmra.mxu1 %vm194_vm4, %v2566_v19 }
0x3660   :  { %3576 = vmatpush3.msra.mxu1 %v4367_v43  ;;  %3583 = vmatprep.mubr.msk.f32.mxu1 %vm3907_vm0, %v3906_v0 }
0x3661   :  { %3577 = vmatprep.subr.mxu1 %v3906_v0 }
0x3662   :  { %3578 = vmatpush3.msra.mxu1 %v4370_v45 }
0x3663   :  { %3579 = vmatprep.subr.mxu1 %v3906_v0 }
0x3664   :  { %3580 = vmatpush3.msra.mxu1 %v4373_v50 }
0x3665   :  { %3581 = vmatprep.subr.mxu1 %v3906_v0 }
0x3666   :  { %3582 = vmatpush3.msra.mxu1 %v4379_v46 }
0x371f   :  { %v2635_v20 = vpop.f32.mrf.mxu1 }
0x3720   :  { %v2639_v21 = vadd.f32 %v2635_v20, %v4414_v55 }
0x3721   :  { %v3563_v1 = vpop.f32.mrf.mxu1 }
0x3722   :  { %3778 = vtanh.f32 %v2639_v21  ;;  %v3155_v24 = vmul.f32 -1.442695, %v2639_v21 }
0x3724   :  { %3780 = vpow2.f32 %v3155_v24 }
0x372f   :  { %v3779_v22 = vpop.eup %3778 }
0x3730   :  { %2652 = vrot.lane.b32.xlu0 %v3779_v22, %s3908_s17 }
0x3731   :  { %v3781_v25 = vpop.eup %3780 }
0x3732   :  { %v2643_v26 = vadd.f32 1.0, %v3781_v25 }
0x3734   :  { %3782 = vrcp.f32 %v2643_v26 }
0x3741   :  { %v3783_v27 = vpop.eup %3782 }
0x3742   :  { %v2650_v31 = vmul.f32 %v3783_v27, %v2648_v30 }
0x37a2   :  { %v2653_v12 = vpop.permute.xlu0 %2652 }
0x37a3   :  { %v2655_v28 = vmul.f32 %v3783_v27, %v2653_v12 }
0x37a5   :  { %2657 = vrot.lane.b32.xlu1 %v2655_v28, %s3909_s3 }
0x3817   :  { %v2658_v32 = vpop.permute.xlu1 %2657 }
0x3818   :  { %v2660_v33 = vadd.f32 %v2658_v32, %v2650_v31 }
0x381a   :  { %3784 = vtanh.f32 %v2660_v33 }
0x3827   :  { %v3785_v34 = vpop.eup %3784 }
0x3828   :  { %2663 = vrot.lane.b32.xlu0 %v3785_v34, %s3908_s17 }
0x389a   :  { %v2664_v62 = vpop.permute.xlu0 %2663 }
0x389b   :  { %v2666_v36 = vmul.f32 %v3783_v27, %v2664_v62  ;;  %v3006_v62 = vld [vmem:[%s4574_s10 + $0x10] sm:$0xff] }
0x389d   :  { %2668 = vrot.lane.b32.xlu1 %v2666_v36, %s3909_s3  ;;  %v3005_v36 = vld [vmem:[%s4574_s10 + $0x8] sm:$0xff] }
0x390f   :  { %v2669_v37 = vpop.permute.xlu1 %2668 }
0x3910   :  { %2671 = vst.msk [vmem:[#allocation2 + $0x8] sm:$0x3] %vm297_vm3, %v2669_v37  ;;  %3573 = vmatmul.mubr.msk.f32.vlgmr.msra.gmra.mxu0 %vm194_vm4, %v2669_v37 }
0x3911   :  { %3587 = vmatpush3.msra.mxu0 %v4367_v43  ;;  %3594 = vmatprep.mubr.msk.f32.mxu0 %vm3907_vm0, %v3906_v0 }
0x3912   :  { %3588 = vmatprep.subr.mxu0 %v3906_v0 }
0x3913   :  { %3589 = vmatpush3.msra.mxu0 %v4370_v45 }
0x3914   :  { %3590 = vmatprep.subr.mxu0 %v3906_v0 }
0x3915   :  { %3591 = vmatpush3.msra.mxu0 %v4373_v50 }
0x3916   :  { %3592 = vmatprep.subr.mxu0 %v3906_v0  ;;  %v2756_v0 = vrot.slane %v2660_v33, 6 }
0x3917   :  { %3593 = vmatpush3.msra.mxu0 %v4379_v46 }
0x39d0   :  { %v2740_v38 = vpop.f32.mrf.mxu0 }
0x39d1   :  { %v2745_v39 = vrot.slane %v2740_v38, 6 }
0x39d2   :  { %v3574_v40 = vpop.f32.mrf.mxu0 }
0x39d3   :  { %v2747_v43 = vadd.f32 %v2745_v39, %v4414_v55 }
0x39d5   :  { %3786 = vtanh.f32 %v2747_v43  ;;  %v3157_v41 = vmul.f32 -1.442695, %v2747_v43 }
0x39d7   :  { %3788 = vpow2.f32 %v3157_v41 }
0x39e2   :  { %v3787_v10 = vpop.eup %3786 }
0x39e3   :  { %2760 = vrot.lane.b32.xlu0 %v3787_v10, %s3908_s17 }
0x39e4   :  { %v3789_v45 = vpop.eup %3788 }
0x39e5   :  { %v2751_v23 = vadd.f32 1.0, %v3789_v45  ;;  %v3162_v45 = vld [vmem:[#allocation8] ss:$0 sm:$0xff] }
0x39e7   :  { %3790 = vrcp.f32 %v2751_v23 }
0x39f4   :  { %v3791_v42 = vpop.eup %3790 }
0x39f5   :  { %v2758_v46 = vmul.f32 %v3791_v42, %v2756_v0 }
0x3a55   :  { %v2761_v50 = vpop.permute.xlu0 %2760 }
0x3a56   :  { %v2763_v44 = vmul.f32 %v3791_v42, %v2761_v50 }
0x3a58   :  { %2765 = vrot.lane.b32.xlu1 %v2763_v44, %s3909_s3 }
0x3aca   :  { %v2766_v7 = vpop.permute.xlu1 %2765 }
0x3acb   :  { %v2768_v47 = vadd.f32 %v2766_v7, %v2758_v46 }
0x3acd   :  { %3792 = vtanh.f32 %v2768_v47  ;;  %v2867_v3 = vrot.slane %v2768_v47, 6 }
0x3ada   :  { %v3793_v51 = vpop.eup %3792 }
0x3adb   :  { %2771 = vrot.lane.b32.xlu0 %v3793_v51, %s3908_s17 }
0x3b4d   :  { %v2772_v29 = vpop.permute.xlu0 %2771 }
0x3b4e   :  { %v4511_v48 = vmul.f32 %v3791_v42, %v2772_v29 }
0x3b50   :  { %v2780_v52 = vrot.slane %v4511_v48, 2 }
0x3b52   :  { %2781 = vrot.lane.b32.xlu1 %v2780_v52, %s3909_s3 }
0x3bc4   :  { %v2782_v49 = vpop.permute.xlu1 %2781 }
0x3bc5   :  { %3584 = vmatmul.mubr.msk.f32.vlgmr.msra.gmra.mxu1 %vm194_vm4, %v2782_v49 }
0x3c85   :  { %v2851_v8 = vpop.f32.mrf.mxu1 }
0x3c86   :  { %v2856_v2 = vrot.slane %v2851_v8, 4 }
0x3c87   :  { %v3585_v54 = vpop.f32.mrf.mxu1 }
0x3c88   :  { %v2858_v5 = vadd.f32 %v2856_v2, %v4414_v55 }
0x3c8a   :  { %3794 = vtanh.f32 %v2858_v5  ;;  %v3159_v57 = vmul.f32 -1.442695, %v2858_v5 }
0x3c8c   :  { %3796 = vpow2.f32 %v3159_v57 }
0x3c97   :  { %v3795_v56 = vpop.eup %3794 }
0x3c98   :  { %2871 = vrot.lane.b32.xlu0 %v3795_v56, %s3908_s17 }
0x3c99   :  { %v3797_v58 = vpop.eup %3796 }
0x3c9a   :  { %v2862_v59 = vadd.f32 1.0, %v3797_v58 }
0x3c9c   :  { %3798 = vrcp.f32 %v2862_v59 }
0x3ca9   :  { %v3799_v60 = vpop.eup %3798 }
0x3caa   :  { %v2869_v4 = vmul.f32 %v3799_v60, %v2867_v3 }
0x3d0a   :  { %v2872_v61 = vpop.permute.xlu0 %2871 }
0x3d0b   :  { %v2874_v63 = vmul.f32 %v3799_v60, %v2872_v61 }
0x3d0d   :  { %2876 = vrot.lane.b32.xlu1 %v2874_v63, %s3909_s3 }
0x3d7f   :  { %v2877_v9 = vpop.permute.xlu1 %2876 }
0x3d80   :  { %v2879_v11 = vadd.f32 %v2877_v9, %v2869_v4 }
0x3d82   :  { %3800 = vtanh.f32 %v2879_v11 }
0x3d8f   :  { %v3801_v13 = vpop.eup %3800 }
0x3d90   :  { %2882 = vrot.lane.b32.xlu0 %v3801_v13, %s3908_s17 }
0x3e02   :  { %v2883_v14 = vpop.permute.xlu0 %2882 }
0x3e03   :  { %v2885_v15 = vmul.f32 %v3799_v60, %v2883_v14 }
0x3e05   :  { %v2891_v6 = vrot.slane %v2885_v15, 4 }
0x3e07   :  { %2892 = vrot.lane.b32.xlu1 %v2891_v6, %s3909_s3 }
0x3e79   :  { %v2893_v16 = vpop.permute.xlu1 %2892 }
0x3e7a   :  { %3595 = vmatmul.mubr.msk.f32.vlgmr.msra.gmra.mxu0 %vm194_vm4, %v2893_v16 }
0x3f3a   :  { %v2962_v18 = vpop.f32.mrf.mxu0 }
0x3f3b   :  { %v2967_v19 = vrot.slane %v2962_v18, 2 }
0x3f3c   :  { %v3596_v20 = vpop.f32.mrf.mxu0 }
0x3f3d   :  { %v2969_v21 = vadd.f32 %v2967_v19, %v4414_v55  ;;  %v2978_v55 = vrot.slane %v2879_v11, 6 }
0x3f3f   :  { %3802 = vtanh.f32 %v2969_v21  ;;  %v3161_v22 = vmul.f32 -1.442695, %v2969_v21 }
0x3f41   :  { %3804 = vpow2.f32 %v3161_v22 }
0x3f4c   :  { %v3803_v1 = vpop.eup %3802 }
0x3f4d   :  { %2982 = vrot.lane.b32.xlu0 %v3803_v1, %s3908_s17 }
0x3f4e   :  { %v3805_v24 = vpop.eup %3804 }
0x3f4f   :  { %v2973_v25 = vadd.f32 1.0, %v3805_v24 }
0x3f51   :  { %3806 = vrcp.f32 %v2973_v25 }
0x3f5e   :  { %v3807_v26 = vpop.eup %3806 }
0x3f5f   :  { %v2980_v28 = vmul.f32 %v3807_v26, %v2978_v55 }
0x3fbf   :  { %v2983_v27 = vpop.permute.xlu0 %2982 }
0x3fc0   :  { %v2985_v12 = vmul.f32 %v3807_v26, %v2983_v27 }
0x3fc2   :  { %2987 = vrot.lane.b32.xlu1 %v2985_v12, %s3909_s3 }
0x3fc6   :  { %2338 = vrot.lane.b32.xlu1 %v4439_v35, %s3909_s3 }
0x3fca   :  { %2560 = vrot.lane.b32.xlu1 %v4477_v17, %s3909_s3  ;;  %v3007_v17 = vld [vmem:[%s4574_s10 + $0x18] sm:$0xff] }
0x3fcb   :  { %3597 = vmatprep.subr.mxu1 %v3007_v17 }
0x3fcc   :  { %3598 = vmatpush3.msra.mxu1 %v3007_v17 }
0x3fcd   :  { %3599 = vmatprep.subr.mxu1 %v3006_v62 }
0x3fce   :  { %2887 = vrot.lane.b32.xlu1 %v2885_v15, %s3909_s3  ;;  %3600 = vmatpush3.msra.mxu1 %v3006_v62 }
0x3fcf   :  { %3601 = vmatprep.subr.mxu1 %v3005_v36 }
0x3fd0   :  { %3602 = vmatpush3.msra.mxu1 %v3005_v36 }
0x4034   :  { %v2988_v30 = vpop.permute.xlu1 %2987 }
0x4035   :  { %v2990_v31 = vadd.f32 %v2988_v30, %v2980_v28 }
0x4037   :  { %3808 = vtanh.f32 %v2990_v31 }
0x4038   :  { %v2339_v32 = vpop.permute.xlu1 %2338 }
0x4039   :  { %2341 = vst.msk [vmem:[#allocation2] sm:$0xc] %vm406_vm5, %v2339_v32 }
0x403c   :  { %v2561_v33 = vpop.permute.xlu1 %2560 }
0x403d   :  { %2563 = vst.msk [vmem:[#allocation2] sm:$0xc0] %vm630_vm6, %v2561_v33 }
0x4040   :  { %v2888_v34 = vpop.permute.xlu1 %2887 }
0x4041   :  { %2890 = vst.msk [vmem:[#allocation2 + $0x8] sm:$0x30] %vm518_vm7, %v2888_v34 }
0x4044   :  { %v3809_v35 = vpop.eup %3808 }
0x4045   :  { %2993 = vrot.lane.b32.xlu0 %v3809_v35, %s3908_s17 }
0x4049   :  { %2449 = vrot.lane.b32.xlu0 %v4458_v53, %s3909_s3  ;;  %v3004_v53 = vld [vmem:[%s4574_s10] sm:$0xff] }
0x404a   :  { %3603 = vmatprep.subr.mxu1 %v3004_v53 }
0x404b   :  { %3604 = vmatpush3.msra.mxu1 %v3004_v53 }
0x404d   :  { %2776 = vrot.lane.b32.xlu0 %v4511_v48, %s3909_s3 }
0x40b7   :  { %v2994_v37 = vpop.permute.xlu0 %2993 }
0x40b8   :  { %v2996_v38 = vmul.f32 %v3807_v26, %v2994_v37 }
0x40ba   :  { %2998 = vrot.lane.b32.xlu0 %v2996_v38, %s3909_s3 }
0x40bb   :  { %v2450_v39 = vpop.permute.xlu0 %2449 }
0x40bc   :  { %2452 = vst.msk [vmem:[#allocation2] sm:$0x30] %vm518_vm7, %v2450_v39 }
0x40bf   :  { %v2777_v40 = vpop.permute.xlu0 %2776 }
0x40c0   :  { %2779 = vst.msk [vmem:[#allocation2 + $0x8] sm:$0xc] %vm406_vm5, %v2777_v40 }
0x40c3   :  { %v3002_v43 = vld [vmem:[#allocation2] sm:$0xff] }
0x40c4   :  { %3605 = vmatprep.mubr.msk.f32.mxu1 %vm194_vm4, %v3002_v43 }
0x412c   :  { %v2999_v10 = vpop.permute.xlu0 %2998 }
0x412d   :  { %3001 = vst.msk [vmem:[#allocation2 + $0x8] sm:$0xc0] %vm630_vm6, %v2999_v10 }
0x4134   :  { %v3003_v41 = vld [vmem:[#allocation2 + $0x8] sm:$0xff] }
0x4135   :  { %3606 = vmatmul.mubr.msk.f32.vlgmr.msra.gmra.mxu1 %vm194_vm4, %v3003_v41 }
0x41f5   :  { %v3607_v23 = vpop.f32.mrf.mxu1 }
0x41f6   :  { %v3093_v42 = vadd.f32 %v3607_v23, %v3162_v45 }
0x41f7   :  { %v3087_v50 = vpop.f32.mrf.mxu1 }
0x41f8   :  { %3810 = vtanh.f32 %v3093_v42  ;;  %v3088_v44 = vadd.f32 %v3162_v45, %v3087_v50 }
0x41fa   :  { %3812 = vtanh.f32 %v3088_v44 }
0x4205   :  { %v3811_v0 = vpop.eup %3810 }
0x4206   :  { %3099 = vst.msk [vmem:[%s4576_s12 + $0x8] sm:$0xff] %vm104_vm2, %v3811_v0 }
0x4207   :  { %v3813_v46 = vpop.eup %3812 }
0x4208   :  { %3098 = vst.msk [vmem:[%s4576_s12] sm:$0xff] %vm104_vm2, %v3813_v46 }
0x4209   :  { %3104 = vsyncpa [#allocation4], 1 }
0x420a   :  { %3105 = vsyncpa [#allocation6], 1 }
0x420b   :  { %3106 = vsyncpa [#allocation9], 1 }

</bundles_post_ra>
